<compile_context>
chip_gen: v7x
topology: tpu7x:2x2x1
jax: 0.10.0
libtpu: 0.0.40
codegen_flags: <defaults>
</compile_context>

<pallas_src>
import functools

import jax
import jax.numpy as jnp
from jax.experimental import pallas as pl
from jax.experimental.pallas import tpu as pltpu

EPS = 1e-5


def _round_up(v, m):
    return (v + m - 1) // m * m


def _fold_bn(gamma, beta, mean, var):
    s = gamma / jnp.sqrt(var + EPS)
    return s, beta - mean * s


# ---------------------------------------------------------------------------
# Fused kernel: one output-row tile (th_out rows) per grid step.
# ---------------------------------------------------------------------------
def _fused_ir_kernel(*refs, H, W, Wo, stride, th_out, use_res, has_expand,
                     compute_dtype):
    if has_expand:
        (xp_ref, w1_ref, b1_ref, wdw_ref, b2_ref, w3_ref, b3_ref,
         o_ref, hid_ref) = refs
    else:
        (xp_ref, wdw_ref, b2_ref, w3_ref, b3_ref, o_ref, hid_ref) = refs

    rt = pl.program_id(1)
    th_in = (th_out - 1) * stride + 3          # stride-1 hidden rows needed
    Wp = xp_ref.shape[1]                       # padded (and 8-aligned) width
    hidden = hid_ref.shape[-1]
    Cin = xp_ref.shape[-1]
    Cout = o_ref.shape[-1]

    # First padded-input row needed by this output-row tile.
    r0 = pl.multiple_of(rt * (th_out * stride), th_out * stride)

    # ---- Stage 1: 1x1 expand conv + BN + ReLU6, kept entirely in VMEM ----
    xs = xp_ref[pl.ds(r0, th_in), :, :]                       # (th_in, Wp, Cin)
    if has_expand:
        h = jnp.dot(xs.reshape(th_in * Wp, Cin).astype(compute_dtype),
                    w1_ref[...], preferred_element_type=jnp.float32)
        h = jnp.clip(h + b1_ref[...], 0.0, 6.0).reshape(th_in, Wp, hidden)
        # The depthwise conv zero-pads its *input* (the hidden activation), so
        # halo positions must be 0, not relu6(b1): mask rows/cols outside the
        # original image.
        row = r0 + jax.lax.broadcasted_iota(jnp.int32, (th_in, 1, 1), 0)
        col = jax.lax.broadcasted_iota(jnp.int32, (1, Wp, 1), 1)
        inside = (row >= 1) & (row <= H) & (col >= 1) & (col <= W)
        h = jnp.where(inside, h, 0.0)
    else:
        h = xs.astype(jnp.float32)             # hidden == Cin; x-padding is 0
    hid_ref[...] = h

    # ---- Stage 2: 3x3 depthwise conv (stride) + BN + ReLU6 (f32, VPU) ----
    acc = None
    for kh in range(3):
        for kw in range(3):
            k = kh * 3 + kw
            if stride == 1:
                tap = hid_ref[pl.ds(kh, th_out), pl.ds(kw, Wo), :]
            else:
                tap = hid_ref[pl.ds(kh, th_out, stride),
                              pl.ds(kw, Wo, stride), :]
            term = tap * wdw_ref[k:k + 1, :]
            acc = term if acc is None else acc + term
    acc = jnp.clip(acc + b2_ref[...], 0.0, 6.0)

    # ---- Stage 3: 1x1 project conv + BN (+ residual), f32 accumulation ----
    a2 = acc.reshape(th_out * Wo, hidden).astype(compute_dtype)
    y = jnp.dot(a2, w3_ref[...], preferred_element_type=jnp.float32)
    y = y + b3_ref[...]
    if use_res:
        # stride == 1 and inp == oup here; residual taken from the (f32)
        # padded-input block already resident in VMEM.
        res = xp_ref[pl.ds(r0 + 1, th_out), pl.ds(1, W), :]   # (th_out, W, Cin)
        y = y + res.reshape(th_out * Wo, Cout).astype(jnp.float32)
    o_ref[...] = y.reshape(th_out, Wo, Cout).astype(o_ref.dtype)


def _pick_th_out(Ho, Wp, hidden, stride, vmem_budget_bytes=4 << 20):
    """Largest divisor of Ho whose hidden row-tile fits the VMEM budget,
    preferring >=2 row tiles so the grid is deep enough to pipeline and to
    feed both TensorCores on v7x."""
    def hid_bytes(t):
        return ((t - 1) * stride + 3) * Wp * hidden * 4

    fits = [t for t in range(1, Ho + 1)
            if Ho % t == 0 and hid_bytes(t) <= vmem_budget_bytes]
    if not fits:
        return 1
    proper = [t for t in fits if t < Ho]
    return (proper or fits)[-1]


# ---------------------------------------------------------------------------
# Parameter preparation (done once, outside the hot path): fold BatchNorm
# (eval semantics) into the conv weights, transpose to matmul layout, cast the
# MXU operands to the compute dtype.
# ---------------------------------------------------------------------------
def prepare_params(p, *, expand_ratio, compute_dtype=jnp.bfloat16):
    prep = {}
    if expand_ratio != 1:
        s1, b1 = _fold_bn(p["g1"], p["b1"], p["m1"], p["v1"])
        w1 = jnp.transpose(p["w_exp"][:, :, 0, 0], (1, 0))        # (inp, hidden)
        prep["w1"] = (w1 * s1[None, :]).astype(compute_dtype)
        prep["b1"] = b1.reshape(1, -1).astype(jnp.float32)
    s2, b2 = _fold_bn(p["g2"], p["b2"], p["m2"], p["v2"])
    wdw = jnp.transpose(p["w_dw"][:, 0, :, :], (1, 2, 0))          # (3,3,hidden)
    prep["wdw"] = (wdw * s2[None, None, :]).reshape(9, -1).astype(jnp.float32)
    prep["b2"] = b2.reshape(1, -1).astype(jnp.float32)
    s3, b3 = _fold_bn(p["g3"], p["b3"], p["m3"], p["v3"])
    w3 = jnp.transpose(p["w_proj"][:, :, 0, 0], (1, 0))            # (hidden, oup)
    prep["w3"] = (w3 * s3[None, :]).astype(compute_dtype)
    prep["b3"] = b3.reshape(1, -1).astype(jnp.float32)
    return prep


# ---------------------------------------------------------------------------
# Forward (Pallas path).  NCHW in / NCHW out to match the PyTorch module.
# ---------------------------------------------------------------------------
@functools.partial(jax.jit, static_argnames=("stride", "expand_ratio", "inp",
                                             "oup", "compute_dtype"))
def inverted_residual_pallas(x_nchw, prep, *, stride, expand_ratio, inp, oup,
                             compute_dtype=jnp.bfloat16):
    use_res = (stride == 1) and (inp == oup)
    has_expand = expand_ratio != 1

    x = jnp.transpose(x_nchw, (0, 2, 3, 1))                  # NCHW -> NHWC
    N, H, W, Cin = x.shape
    hidden = prep["wdw"].shape[-1]
    Cout = prep["w3"].shape[-1]
    Ho = (H - 1) // stride + 1
    Wo = (W - 1) // stride + 1

    # Pad only the small Cin-channel input: 1-row/col halo for the 3x3 window,
    # plus right-padding so the padded width is 8-aligned (keeps all in-kernel
    # reshapes layout-compatible).
    Wp = _round_up(W + 2, 8)
    xp = jnp.pad(x, ((0, 0), (1, 1), (1, Wp - W - 1), (0, 0)))
    xp3 = xp.reshape(N * (H + 2), Wp, Cin)

    th_out = _pick_th_out(Ho, Wp, hidden, stride)
    RT = Ho // th_out
    th_in = (th_out - 1) * stride + 3

    kernel = functools.partial(
        _fused_ir_kernel, H=H, W=W, Wo=Wo, stride=stride, th_out=th_out,
        use_res=use_res, has_expand=has_expand, compute_dtype=compute_dtype)

    in_specs = [pl.BlockSpec((H + 2, Wp, Cin), lambda n, rt: (n, 0, 0))]
    args = [xp3]
    if has_expand:
        in_specs += [pl.BlockSpec((Cin, hidden), lambda n, rt: (0, 0)),
                     pl.BlockSpec((1, hidden), lambda n, rt: (0, 0))]
        args += [prep["w1"], prep["b1"]]
    in_specs += [pl.BlockSpec((9, hidden), lambda n, rt: (0, 0)),
                 pl.BlockSpec((1, hidden), lambda n, rt: (0, 0)),
                 pl.BlockSpec((hidden, Cout), lambda n, rt: (0, 0)),
                 pl.BlockSpec((1, Cout), lambda n, rt: (0, 0))]
    args += [prep["wdw"], prep["b2"], prep["w3"], prep["b3"]]

    y = pl.pallas_call(
        kernel,
        out_shape=jax.ShapeDtypeStruct((N * Ho, Wo, Cout), x.dtype),
        grid_spec=pltpu.PrefetchScalarGridSpec(
            num_scalar_prefetch=0,
            grid=(N, RT),
            in_specs=in_specs,
            out_specs=pl.BlockSpec((th_out, Wo, Cout),
                                   lambda n, rt: (n * RT + rt, 0, 0)),
            scratch_shapes=[pltpu.VMEM((th_in, Wp, hidden), jnp.float32)],
        ),
        compiler_params=pltpu.CompilerParams(
            dimension_semantics=("parallel", "parallel"),
            vmem_limit_bytes=32 * 1024 * 1024),
    )(*args)

    y = y.reshape(N, Ho, Wo, Cout)
    return jnp.transpose(y, (0, 3, 1, 2))                    # NHWC -> NCHW


# ---------------------------------------------------------------------------
# Pure-JAX reference (mirrors the PyTorch forward, NCHW)
# ---------------------------------------------------------------------------
def inverted_residual_ref(x, p, *, stride, expand_ratio, inp, oup):
    dn = ("NCHW", "OIHW", "NCHW")

    def bn(x, g, b, m, v):
        g = g[None, :, None, None]
        b = b[None, :, None, None]
        m = m[None, :, None, None]
        v = v[None, :, None, None]
        return (x - m) / jnp.sqrt(v + EPS) * g + b

    h = x
    if expand_ratio != 1:
        h = jax.lax.conv_general_dilated(h, p["w_exp"], (1, 1), "VALID",
                                         dimension_numbers=dn)
        h = jnp.clip(bn(h, p["g1"], p["b1"], p["m1"], p["v1"]), 0.0, 6.0)
    hidden = p["w_dw"].shape[0]
    h = jax.lax.conv_general_dilated(h, p["w_dw"], (stride, stride),
                                     ((1, 1), (1, 1)), dimension_numbers=dn,
                                     feature_group_count=hidden)
    h = jnp.clip(bn(h, p["g2"], p["b2"], p["m2"], p["v2"]), 0.0, 6.0)
    h = jax.lax.conv_general_dilated(h, p["w_proj"], (1, 1), "VALID",
                                     dimension_numbers=dn)
    h = bn(h, p["g3"], p["b3"], p["m3"], p["v3"])
    if stride == 1 and inp == oup:
        h = x + h
    return h


# ---------------------------------------------------------------------------
def make_params(key, inp, oup, expand_ratio):
    hidden = int(round(inp * expand_ratio))
    ks = jax.random.split(key, 16)
    f32 = jnp.float32

    def bn_params(k0, k1, k2, k3, c):
        g = jax.random.uniform(k0, (c,), f32, 0.5, 1.5)
        b = jax.random.normal(k1, (c,), f32) * 0.1
        m = jax.random.normal(k2, (c,), f32) * 0.1
        v = jax.random.uniform(k3, (c,), f32, 0.5, 1.5)
        return g, b, m, v

    p = {}
    p["w_exp"] = jax.random.normal(ks[0], (hidden, inp, 1, 1), f32) * 0.2
    p["g1"], p["b1"], p["m1"], p["v1"] = bn_params(ks[1], ks[2], ks[3], ks[4], hidden)
    p["w_dw"] = jax.random.normal(ks[5], (hidden, 1, 3, 3), f32) * 0.2
    p["g2"], p["b2"], p["m2"], p["v2"] = bn_params(ks[6], ks[7], ks[8], ks[9], hidden)
    p["w_proj"] = jax.random.normal(ks[10], (oup, hidden, 1, 1), f32) * 0.2
    p["g3"], p["b3"], p["m3"], p["v3"] = bn_params(ks[11], ks[12], ks[13], ks[14], oup)
    return p, hidden


if __name__ == "__main__":
    # Small config: inp == oup and stride == 1 -> residual path is exercised.
    N, inp, oup, H, W = 2, 8, 8, 16, 16
    stride, expand_ratio = 1, 4

    key = jax.random.PRNGKey(0)
    kx, kp = jax.random.split(key)
    x = jax.random.normal(kx, (N, inp, H, W), jnp.float32)
    params, hidden = make_params(kp, inp, oup, expand_ratio)

    ref = inverted_residual_ref(x, params, stride=stride,
                                expand_ratio=expand_ratio, inp=inp, oup=oup)
    ref = jax.block_until_ready(ref)

    # 1) f32 compute path: strict numerical check of the fused kernel.
    prep32 = prepare_params(params, expand_ratio=expand_ratio,
                            compute_dtype=jnp.float32)
    out32 = inverted_residual_pallas(x, prep32, stride=stride,
                                     expand_ratio=expand_ratio, inp=inp,
                                     oup=oup, compute_dtype=jnp.float32)
    out32 = jax.block_until_ready(out32)
    assert out32.shape == ref.shape == (N, oup, H // stride, W // stride)
    assert bool(jnp.allclose(out32, ref, rtol=1e-3, atol=1e-3)), \
        float(jnp.max(jnp.abs(out32 - ref)))

    # 2) bf16 MXU-operand path (performance default): looser tolerance since
    #    the reference is full f32.
    prepbf = prepare_params(params, expand_ratio=expand_ratio,
                            compute_dtype=jnp.bfloat16)
    outbf = inverted_residual_pallas(x, prepbf, stride=stride,
                                     expand_ratio=expand_ratio, inp=inp,
                                     oup=oup, compute_dtype=jnp.bfloat16)
    outbf = jax.block_until_ready(outbf)
    assert outbf.shape == ref.shape
    assert bool(jnp.allclose(outbf, ref, rtol=5e-2, atol=5e-2)), \
        float(jnp.max(jnp.abs(outbf - ref)))

    print("KERNEL_OK")
</pallas_src>

<mosaic_0001>
module attributes {stable_mosaic.version = 11 : i64} {
  func.func @_fused_ir_kernel(%arg0: i32, %arg1: i32, %arg2: memref<18x24x8xf32, #tpu.memory_space<vmem>>, %arg3: memref<8x32xf32, #tpu.memory_space<vmem>>, %arg4: memref<1x32xf32, #tpu.memory_space<vmem>>, %arg5: memref<9x32xf32, #tpu.memory_space<vmem>>, %arg6: memref<1x32xf32, #tpu.memory_space<vmem>>, %arg7: memref<32x8xf32, #tpu.memory_space<vmem>>, %arg8: memref<1x8xf32, #tpu.memory_space<vmem>>, %arg9: memref<8x16x8xf32, #tpu.memory_space<vmem>>, %arg10: memref<10x24x32xf32, #tpu.memory_space<vmem>>) attributes {dimension_semantics = [#tpu.dimension_semantics<parallel>, #tpu.dimension_semantics<parallel>], iteration_bounds = array<i64: 2, 2>, scalar_prefetch = 0 : i64, scratch_operands = 1 : i64, tpu.core_type = #tpu.core_type<tc>, window_params = [{transform_indices = @transform_0, window_bounds = array<i64: 18, 24, 8>}, {pipeline_mode = #tpu.pipeline_mode<synchronous>, transform_indices = @transform_1, window_bounds = array<i64: 8, 32>}, {pipeline_mode = #tpu.pipeline_mode<synchronous>, transform_indices = @transform_2, window_bounds = array<i64: 1, 32>}, {pipeline_mode = #tpu.pipeline_mode<synchronous>, transform_indices = @transform_3, window_bounds = array<i64: 9, 32>}, {pipeline_mode = #tpu.pipeline_mode<synchronous>, transform_indices = @transform_4, window_bounds = array<i64: 1, 32>}, {pipeline_mode = #tpu.pipeline_mode<synchronous>, transform_indices = @transform_5, window_bounds = array<i64: 32, 8>}, {pipeline_mode = #tpu.pipeline_mode<synchronous>, transform_indices = @transform_6, window_bounds = array<i64: 1, 8>}, {transform_indices = @transform_7, window_bounds = array<i64: 8, 16, 8>}]} {
    %c8_i32 = arith.constant 8 : i32
    %0 = arith.muli %arg1, %c8_i32 : i32
    %1 = tpu.assume_multiple %0, 8 : i32
    %2 = arith.index_cast %1 : i32 to index
    %c0 = arith.constant 0 : index
    %c0_0 = arith.constant 0 : index
    %3 = vector.load %arg2[%2, %c0, %c0_0] : memref<18x24x8xf32, #tpu.memory_space<vmem>>, vector<10x24x8xf32>
    %4 = vector.shape_cast %3 : vector<10x24x8xf32> to vector<240x8xf32>
    %c0_1 = arith.constant 0 : index
    %c0_2 = arith.constant 0 : index
    %5 = vector.load %arg3[%c0_1, %c0_2] : memref<8x32xf32, #tpu.memory_space<vmem>>, vector<8x32xf32>
    %cst = arith.constant dense<0.000000e+00> : vector<240x32xf32>
    %6 = tpu.matmul %4, %5, %cst {dimension_numbers = #tpu.dot_dimension_numbers<[1], [0], [0], [1], [0, 0, 1, 1], [], []>} : vector<240x8xf32>, vector<8x32xf32>, vector<240x32xf32> -> vector<240x32xf32>
    %c0_3 = arith.constant 0 : index
    %c0_4 = arith.constant 0 : index
    %7 = vector.load %arg4[%c0_3, %c0_4] : memref<1x32xf32, #tpu.memory_space<vmem>>, vector<1x32xf32>
    %8 = vector.broadcast %7 : vector<1x32xf32> to vector<240x32xf32>
    %9 = arith.addf %6, %8 : vector<240x32xf32>
    %cst_5 = arith.constant 0.000000e+00 : f32
    %cst_6 = arith.constant 6.000000e+00 : f32
    %10 = vector.broadcast %cst_5 : f32 to vector<240x32xf32>
    %11 = arith.maximumf %10, %9 : vector<240x32xf32>
    %12 = vector.broadcast %cst_6 : f32 to vector<240x32xf32>
    %13 = arith.minimumf %12, %11 : vector<240x32xf32>
    %14 = vector.shape_cast %13 : vector<240x32xf32> to vector<10x24x32xf32>
    %15 = tpu.iota {dimensions = array<i32: 0>} : vector<10x1x1xi32>
    %16 = vector.broadcast %1 : i32 to vector<10x1x1xi32>
    %17 = arith.addi %16, %15 : vector<10x1x1xi32>
    %18 = tpu.iota {dimensions = array<i32: 1>} : vector<1x24x1xi32>
    %c1_i32 = arith.constant 1 : i32
    %19 = vector.broadcast %c1_i32 : i32 to vector<10x1x1xi32>
    %20 = arith.cmpi sge, %17, %19 : vector<10x1x1xi32>
    %c16_i32 = arith.constant 16 : i32
    %21 = vector.broadcast %c16_i32 : i32 to vector<10x1x1xi32>
    %22 = arith.cmpi sle, %17, %21 : vector<10x1x1xi32>
    %23 = arith.andi %20, %22 : vector<10x1x1xi1>
    %c1_i32_7 = arith.constant 1 : i32
    %24 = vector.broadcast %c1_i32_7 : i32 to vector<1x24x1xi32>
    %25 = arith.cmpi sge, %18, %24 : vector<1x24x1xi32>
    %26 = vector.broadcast %23 : vector<10x1x1xi1> to vector<10x24x1xi1>
    %27 = vector.broadcast %25 : vector<1x24x1xi1> to vector<10x24x1xi1>
    %28 = arith.andi %26, %27 : vector<10x24x1xi1>
    %c16_i32_8 = arith.constant 16 : i32
    %29 = vector.broadcast %c16_i32_8 : i32 to vector<1x24x1xi32>
    %30 = arith.cmpi sle, %18, %29 : vector<1x24x1xi32>
    %31 = vector.broadcast %30 : vector<1x24x1xi1> to vector<10x24x1xi1>
    %32 = arith.andi %28, %31 : vector<10x24x1xi1>
    %cst_9 = arith.constant 0.000000e+00 : f32
    %33 = vector.shape_cast %32 : vector<10x24x1xi1> to vector<10x24x1xi1>
    %34 = vector.broadcast %33 : vector<10x24x1xi1> to vector<10x24x32xi1>
    %35 = vector.broadcast %cst_9 : f32 to vector<10x24x32xf32>
    %36 = arith.select %34, %14, %35 : vector<10x24x32xi1>, vector<10x24x32xf32>
    %c0_10 = arith.constant 0 : index
    %c0_11 = arith.constant 0 : index
    %c0_12 = arith.constant 0 : index
    %37 = vector.load %arg10[%c0_10, %c0_11, %c0_12] : memref<10x24x32xf32, #tpu.memory_space<vmem>>, vector<10x24x32xf32>
    tpu.vector_store %arg10[%c0_10, %c0_11, %c0_12], %36 {strides = array<i32>} : memref<10x24x32xf32, #tpu.memory_space<vmem>>, vector<10x24x32xf32>,
    %c0_13 = arith.constant 0 : index
    %c0_14 = arith.constant 0 : index
    %c0_15 = arith.constant 0 : index
    %38 = vector.load %arg10[%c0_13, %c0_14, %c0_15] : memref<10x24x32xf32, #tpu.memory_space<vmem>>, vector<8x16x32xf32>
    %c0_16 = arith.constant 0 : index
    %c0_17 = arith.constant 0 : index
    %39 = vector.load %arg5[%c0_16, %c0_17] : memref<9x32xf32, #tpu.memory_space<vmem>>, vector<1x32xf32>
    %40 = vector.shape_cast %39 : vector<1x32xf32> to vector<1x1x32xf32>
    %41 = vector.broadcast %40 : vector<1x1x32xf32> to vector<8x16x32xf32>
    %42 = arith.mulf %38, %41 : vector<8x16x32xf32>
    %c0_18 = arith.constant 0 : index
    %c1 = arith.constant 1 : index
    %c0_19 = arith.constant 0 : index
    %43 = vector.load %arg10[%c0_18, %c1, %c0_19] : memref<10x24x32xf32, #tpu.memory_space<vmem>>, vector<8x16x32xf32>
    %c1_20 = arith.constant 1 : index
    %c0_21 = arith.constant 0 : index
    %44 = vector.load %arg5[%c1_20, %c0_21] : memref<9x32xf32, #tpu.memory_space<vmem>>, vector<1x32xf32>
    %45 = vector.shape_cast %44 : vector<1x32xf32> to vector<1x1x32xf32>
    %46 = vector.broadcast %45 : vector<1x1x32xf32> to vector<8x16x32xf32>
    %47 = arith.mulf %43, %46 : vector<8x16x32xf32>
    %48 = arith.addf %42, %47 : vector<8x16x32xf32>
    %c0_22 = arith.constant 0 : index
    %c2 = arith.constant 2 : index
    %c0_23 = arith.constant 0 : index
    %49 = vector.load %arg10[%c0_22, %c2, %c0_23] : memref<10x24x32xf32, #tpu.memory_space<vmem>>, vector<8x16x32xf32>
    %c2_24 = arith.constant 2 : index
    %c0_25 = arith.constant 0 : index
    %50 = vector.load %arg5[%c2_24, %c0_25] : memref<9x32xf32, #tpu.memory_space<vmem>>, vector<1x32xf32>
    %51 = vector.shape_cast %50 : vector<1x32xf32> to vector<1x1x32xf32>
    %52 = vector.broadcast %51 : vector<1x1x32xf32> to vector<8x16x32xf32>
    %53 = arith.mulf %49, %52 : vector<8x16x32xf32>
    %54 = arith.addf %48, %53 : vector<8x16x32xf32>
    %c1_26 = arith.constant 1 : index
    %c0_27 = arith.constant 0 : index
    %c0_28 = arith.constant 0 : index
    %55 = vector.load %arg10[%c1_26, %c0_27, %c0_28] : memref<10x24x32xf32, #tpu.memory_space<vmem>>, vector<8x16x32xf32>
    %c3 = arith.constant 3 : index
    %c0_29 = arith.constant 0 : index
    %56 = vector.load %arg5[%c3, %c0_29] : memref<9x32xf32, #tpu.memory_space<vmem>>, vector<1x32xf32>
    %57 = vector.shape_cast %56 : vector<1x32xf32> to vector<1x1x32xf32>
    %58 = vector.broadcast %57 : vector<1x1x32xf32> to vector<8x16x32xf32>
    %59 = arith.mulf %55, %58 : vector<8x16x32xf32>
    %60 = arith.addf %54, %59 : vector<8x16x32xf32>
    %c1_30 = arith.constant 1 : index
    %c1_31 = arith.constant 1 : index
    %c0_32 = arith.constant 0 : index
    %61 = vector.load %arg10[%c1_30, %c1_31, %c0_32] : memref<10x24x32xf32, #tpu.memory_space<vmem>>, vector<8x16x32xf32>
    %c4 = arith.constant 4 : index
    %c0_33 = arith.constant 0 : index
    %62 = vector.load %arg5[%c4, %c0_33] : memref<9x32xf32, #tpu.memory_space<vmem>>, vector<1x32xf32>
    %63 = vector.shape_cast %62 : vector<1x32xf32> to vector<1x1x32xf32>
    %64 = vector.broadcast %63 : vector<1x1x32xf32> to vector<8x16x32xf32>
    %65 = arith.mulf %61, %64 : vector<8x16x32xf32>
    %66 = arith.addf %60, %65 : vector<8x16x32xf32>
    %c1_34 = arith.constant 1 : index
    %c2_35 = arith.constant 2 : index
    %c0_36 = arith.constant 0 : index
    %67 = vector.load %arg10[%c1_34, %c2_35, %c0_36] : memref<10x24x32xf32, #tpu.memory_space<vmem>>, vector<8x16x32xf32>
    %c5 = arith.constant 5 : index
    %c0_37 = arith.constant 0 : index
    %68 = vector.load %arg5[%c5, %c0_37] : memref<9x32xf32, #tpu.memory_space<vmem>>, vector<1x32xf32>
    %69 = vector.shape_cast %68 : vector<1x32xf32> to vector<1x1x32xf32>
    %70 = vector.broadcast %69 : vector<1x1x32xf32> to vector<8x16x32xf32>
    %71 = arith.mulf %67, %70 : vector<8x16x32xf32>
    %72 = arith.addf %66, %71 : vector<8x16x32xf32>
    %c2_38 = arith.constant 2 : index
    %c0_39 = arith.constant 0 : index
    %c0_40 = arith.constant 0 : index
    %73 = vector.load %arg10[%c2_38, %c0_39, %c0_40] : memref<10x24x32xf32, #tpu.memory_space<vmem>>, vector<8x16x32xf32>
    %c6 = arith.constant 6 : index
    %c0_41 = arith.constant 0 : index
    %74 = vector.load %arg5[%c6, %c0_41] : memref<9x32xf32, #tpu.memory_space<vmem>>, vector<1x32xf32>
    %75 = vector.shape_cast %74 : vector<1x32xf32> to vector<1x1x32xf32>
    %76 = vector.broadcast %75 : vector<1x1x32xf32> to vector<8x16x32xf32>
    %77 = arith.mulf %73, %76 : vector<8x16x32xf32>
    %78 = arith.addf %72, %77 : vector<8x16x32xf32>
    %c2_42 = arith.constant 2 : index
    %c1_43 = arith.constant 1 : index
    %c0_44 = arith.constant 0 : index
    %79 = vector.load %arg10[%c2_42, %c1_43, %c0_44] : memref<10x24x32xf32, #tpu.memory_space<vmem>>, vector<8x16x32xf32>
    %c7 = arith.constant 7 : index
    %c0_45 = arith.constant 0 : index
    %80 = vector.load %arg5[%c7, %c0_45] : memref<9x32xf32, #tpu.memory_space<vmem>>, vector<1x32xf32>
    %81 = vector.shape_cast %80 : vector<1x32xf32> to vector<1x1x32xf32>
    %82 = vector.broadcast %81 : vector<1x1x32xf32> to vector<8x16x32xf32>
    %83 = arith.mulf %79, %82 : vector<8x16x32xf32>
    %84 = arith.addf %78, %83 : vector<8x16x32xf32>
    %c2_46 = arith.constant 2 : index
    %c2_47 = arith.constant 2 : index
    %c0_48 = arith.constant 0 : index
    %85 = vector.load %arg10[%c2_46, %c2_47, %c0_48] : memref<10x24x32xf32, #tpu.memory_space<vmem>>, vector<8x16x32xf32>
    %c8 = arith.constant 8 : index
    %c0_49 = arith.constant 0 : index
    %86 = vector.load %arg5[%c8, %c0_49] : memref<9x32xf32, #tpu.memory_space<vmem>>, vector<1x32xf32>
    %87 = vector.shape_cast %86 : vector<1x32xf32> to vector<1x1x32xf32>
    %88 = vector.broadcast %87 : vector<1x1x32xf32> to vector<8x16x32xf32>
    %89 = arith.mulf %85, %88 : vector<8x16x32xf32>
    %90 = arith.addf %84, %89 : vector<8x16x32xf32>
    %c0_50 = arith.constant 0 : index
    %c0_51 = arith.constant 0 : index
    %91 = vector.load %arg6[%c0_50, %c0_51] : memref<1x32xf32, #tpu.memory_space<vmem>>, vector<1x32xf32>
    %92 = vector.shape_cast %91 : vector<1x32xf32> to vector<1x1x32xf32>
    %93 = vector.broadcast %92 : vector<1x1x32xf32> to vector<8x16x32xf32>
    %94 = arith.addf %90, %93 : vector<8x16x32xf32>
    %cst_52 = arith.constant 0.000000e+00 : f32
    %cst_53 = arith.constant 6.000000e+00 : f32
    %95 = vector.broadcast %cst_52 : f32 to vector<8x16x32xf32>
    %96 = arith.maximumf %95, %94 : vector<8x16x32xf32>
    %97 = vector.broadcast %cst_53 : f32 to vector<8x16x32xf32>
    %98 = arith.minimumf %97, %96 : vector<8x16x32xf32>
    %99 = vector.shape_cast %98 : vector<8x16x32xf32> to vector<128x32xf32>
    %c0_54 = arith.constant 0 : index
    %c0_55 = arith.constant 0 : index
    %100 = vector.load %arg7[%c0_54, %c0_55] : memref<32x8xf32, #tpu.memory_space<vmem>>, vector<32x8xf32>
    %cst_56 = arith.constant dense<0.000000e+00> : vector<128x8xf32>
    %101 = tpu.matmul %99, %100, %cst_56 {dimension_numbers = #tpu.dot_dimension_numbers<[1], [0], [0], [1], [0, 0, 1, 1], [], []>} : vector<128x32xf32>, vector<32x8xf32>, vector<128x8xf32> -> vector<128x8xf32>
    %c0_57 = arith.constant 0 : index
    %c0_58 = arith.constant 0 : index
    %102 = vector.load %arg8[%c0_57, %c0_58] : memref<1x8xf32, #tpu.memory_space<vmem>>, vector<1x8xf32>
    %103 = vector.broadcast %102 : vector<1x8xf32> to vector<128x8xf32>
    %104 = arith.addf %101, %103 : vector<128x8xf32>
    %c1_i32_59 = arith.constant 1 : i32
    %105 = arith.addi %1, %c1_i32_59 : i32
    %106 = arith.index_cast %105 : i32 to index
    %c1_60 = arith.constant 1 : index
    %c0_61 = arith.constant 0 : index
    %107 = vector.load %arg2[%106, %c1_60, %c0_61] : memref<18x24x8xf32, #tpu.memory_space<vmem>>, vector<8x16x8xf32>
    %108 = vector.shape_cast %107 : vector<8x16x8xf32> to vector<128x8xf32>
    %109 = arith.addf %104, %108 : vector<128x8xf32>
    %110 = vector.shape_cast %109 : vector<128x8xf32> to vector<8x16x8xf32>
    %c0_62 = arith.constant 0 : index
    %c0_63 = arith.constant 0 : index
    %c0_64 = arith.constant 0 : index
    %111 = vector.load %arg9[%c0_62, %c0_63, %c0_64] : memref<8x16x8xf32, #tpu.memory_space<vmem>>, vector<8x16x8xf32>
    tpu.vector_store %arg9[%c0_62, %c0_63, %c0_64], %110 {strides = array<i32>} : memref<8x16x8xf32, #tpu.memory_space<vmem>>, vector<8x16x8xf32>,
    return
  }
  func.func @transform_0(%arg0: i32, %arg1: i32) -> (i32, i32, i32) {
    %c0_i32 = arith.constant 0 : i32
    %c0_i32_0 = arith.constant 0 : i32
    %c0_i32_1 = arith.constant 0 : i32
    return %arg0, %c0_i32, %c0_i32_0 : i32, i32, i32
  }
  func.func @transform_1(%arg0: i32, %arg1: i32) -> (i32, i32) {
    %c0_i32 = arith.constant 0 : i32
    %c0_i32_0 = arith.constant 0 : i32
    %c0_i32_1 = arith.constant 0 : i32
    return %c0_i32, %c0_i32_0 : i32, i32
  }
  func.func @transform_2(%arg0: i32, %arg1: i32) -> (i32, i32) {
    %c0_i32 = arith.constant 0 : i32
    %c0_i32_0 = arith.constant 0 : i32
    %c0_i32_1 = arith.constant 0 : i32
    return %c0_i32, %c0_i32_0 : i32, i32
  }
  func.func @transform_3(%arg0: i32, %arg1: i32) -> (i32, i32) {
    %c0_i32 = arith.constant 0 : i32
    %c0_i32_0 = arith.constant 0 : i32
    %c0_i32_1 = arith.constant 0 : i32
    return %c0_i32, %c0_i32_0 : i32, i32
  }
  func.func @transform_4(%arg0: i32, %arg1: i32) -> (i32, i32) {
    %c0_i32 = arith.constant 0 : i32
    %c0_i32_0 = arith.constant 0 : i32
    %c0_i32_1 = arith.constant 0 : i32
    return %c0_i32, %c0_i32_0 : i32, i32
  }
  func.func @transform_5(%arg0: i32, %arg1: i32) -> (i32, i32) {
    %c0_i32 = arith.constant 0 : i32
    %c0_i32_0 = arith.constant 0 : i32
    %c0_i32_1 = arith.constant 0 : i32
    return %c0_i32, %c0_i32_0 : i32, i32
  }
  func.func @transform_6(%arg0: i32, %arg1: i32) -> (i32, i32) {
    %c0_i32 = arith.constant 0 : i32
    %c0_i32_0 = arith.constant 0 : i32
    %c0_i32_1 = arith.constant 0 : i32
    return %c0_i32, %c0_i32_0 : i32, i32
  }
  func.func @transform_7(%arg0: i32, %arg1: i32) -> (i32, i32, i32) {
    %c2_i32 = arith.constant 2 : i32
    %0 = arith.muli %arg0, %c2_i32 : i32
    %1 = arith.addi %0, %arg1 : i32
    %c0_i32 = arith.constant 0 : i32
    %c0_i32_0 = arith.constant 0 : i32
    %c0_i32_1 = arith.constant 0 : i32
    return %1, %c0_i32, %c0_i32_0 : i32, i32, i32
  }
}

</mosaic_0001>

<bundles_post_ra>
// kernel: inverted_residual_pallas.1
= control target key start
LH: loop header
LB: loop body
LE: loop exit
PB: predicated region body
PF: predicated region fallthrough
CT: control target
= control target key end

     0   :  { %s2190_s24 = smov 0   ;;  %s2192_s25 = smov 0   ;;  %s3176_s0 = inlined_call_operand.vmem [shape: f32[36,24,8], index: 0, kind: input, shape index: {}]   ;;  %s3177_s1 = inlined_call_operand.vmem [shape: f32[8,32], index: 1, kind: input, shape index: {}]   ;;  %s3178_s2 = inlined_call_operand.vmem [shape: f32[1,32], index: 2, kind: input, shape index: {}]   ;;  %s3179_s3 = inlined_call_operand.vmem [shape: f32[9,32], index: 3, kind: input, shape index: {}]   ;;  %s3180_s4 = inlined_call_operand.vmem [shape: f32[1,32], index: 4, kind: input, shape index: {}]   ;;  %s3181_s5 = inlined_call_operand.vmem [shape: f32[32,8], index: 5, kind: input, shape index: {}]   ;;  %s3182_s6 = inlined_call_operand.vmem [shape: f32[1,8], index: 6, kind: input, shape index: {}]   ;;  %s3183_s7 = inlined_call_operand.vmem [shape: f32[32,16,8], index: 7, kind: output, shape index: {}]  }
   0x1   :  { %s2194_s26 = smov 0   ;;  %s2196_s27 = smov 0  }
   0x2   :  { %s2198_s28 = smov 0  }
   0x3 LB: > { %s26_s29 = sadd.s32 1, %s2140_s26  ;;  %s29_s30 = sadd.s32 1, %s2144_s27  ;;  %s2148_s28 = sphi %s2198_s28, %s17_s28   ;;  %s2144_s27 = sphi %s2196_s27, %s3265_s27   ;;  %s2140_s26 = sphi %s2194_s26, %s3264_s26   ;;  %s2136_s25 = sphi %s2192_s25, %s3263_s25   ;;  %s2132_s24 = sphi %s2190_s24, %s3262_s24  }
   0x4   : > { %p27_p0 = scmp.ge.s32.totalorder %s26_s29, 2  ;;  %p1840_p1 = scmp.ge.s32.totalorder %s2148_s28, 1 }
   0x5   : > { %p255_p2 = scmp.lt.s32.totalorder %s2148_s28, 5 }
   0x6   : > { %s3267_s29 = smov (%p27_p0, %s26_s29), 0  ;;  %s3269_s30 = smov (!%p27_p0, %s29_s30), %s2144_s27 }
   0x7   : > { %p256_p3 = pnand %p1840_p1, %p255_p2  ;;  %p31_p4 = scmp.ge.s32.totalorder %s3269_s30, 2 }
   0x8   : > { %v342_v0 = vld [vmem:[%s3177_s1] sm:$0xff] (!%p256_p3)  ;;  %s291_s10 = smul.u32 (!%p256_p3), 18, %s2136_s25  ;;  %vm3184_vm0 = vcmask (!%p256_p3), 64512   ;;  %v1498_v32 = vld [vmem:[%s3181_s5 + $0x8] sm:$0xff] (!%p256_p3)  ;;  %v1499_v34 = vld [vmem:[%s3181_s5 + $0x10] sm:$0xff] (!%p256_p3)  ;;  %s1846_s9 = sshll.u32 (!%p256_p3), %s2132_s24, 3  ;;  %v726_v37 = vlaneseq (!%p256_p3) }
   0x9   : > { %s3271_s30 = smov (%p31_p4, %s3269_s30), 0  ;;  %259 = sbr.rel (%p256_p3) target bundleno = 581 (0x245), region = 48 }
   0xa   : > { %1978 = vmatprep.subr.mxu0 (!%p256_p3), %v342_v0  ;;  %2065 = vmatprep.subr.mxu1 (!%p256_p3), %v342_v0  ;;  %p292_p5 = scmp.lt.s32.totalorder (!%p256_p3), %s291_s10, 35  ;;  %s1847_s11 = smul.u32 (!%p256_p3), 192, %s2132_s24  ;;  %v1497_v31 = vld [vmem:[%s3181_s5] sm:$0xff] (!%p256_p3)  ;;  %v1500_v35 = vld [vmem:[%s3181_s5 + $0x18] sm:$0xff] (!%p256_p3)  ;;  %v716_v38 = vstv (!%p256_p3), %s1846_s9  ;;  %v2307_v39 = vshrl.u32 (!%p256_p3), %v726_v37, 7  ;;  %vm948_vm7 = vcmask (!%p256_p3), 261120  }
   0xb   : > { %1979 = vmatpush3.msra.mxu0 (!%p256_p3), %v342_v0  ;;  %2066 = vmatpush3.msra.mxu1 (!%p256_p3), %v342_v0  ;;  %v2057_v33 = vpack.c.bf16 (!%p256_p3), %v1498_v32, %v1497_v31  ;;  %v2061_v36 = vpack.c.bf16 (!%p256_p3), %v1500_v35, %v1499_v34  ;;  %v717_v40 = vadd.s32 (!%p256_p3), 1, %v716_v38  ;;  %v2312_v41 = vld [vmem:[%s3178_s2] ss:$0 sm:$0xff] (!%p256_p3)  ;;  %vm730_vm1 = vcmp.ge.s32.totalorder (!%p256_p3), %v716_v38, 1  ;;  %s1842_s22 = sshll.u32 (!%p256_p3), %s2136_s25, 1 }
   0xc   : > { %vm740_vm2 = vcmp.le.s32.totalorder (!%p256_p3), %v716_v38, 16  ;;  %v2315_v42 = vadd.s32 (!%p256_p3), 16, %v2307_v39  ;;  %v718_v44 = vadd.s32 (!%p256_p3), 2, %v716_v38  ;;  %v2317_v45 = vadd.s32 (!%p256_p3), 3, %v716_v38  ;;  %s299_s23 = sadd.s32 (!%p256_p3), %s2132_s24, %s1842_s22 }
   0xd   : > { %2058 = vmatprep.subr.bf16.mxu1 (!%p256_p3), %v2057_v33  ;;  %vm731_vm3 = vcmp.ge.s32.totalorder (!%p256_p3), %v717_v40, 1  ;;  %vm741_vm4 = vcmp.le.s32.totalorder (!%p256_p3), %v717_v40, 16  ;;  %v724_v48 = vadd.s32 (!%p256_p3), 8, %v716_v38  ;;  %vm2320_vm5 = vmand (!%p256_p3), %vm730_vm1, %vm740_vm2  ;;  %vm760_vm6 = vcmp.ge.s32.totalorder (!%p256_p3), %v2307_v39, 1  ;;  %s1843_s8 = sshll.u32 (!%p256_p3), %s299_s23, 3 }
   0xe   : > { %vm821_vm8 = vcmp.le.s32.totalorder (!%p256_p3), %v2315_v42, 16  ;;  %vm2327_vm9 = vmand (!%p256_p3), %vm731_vm3, %vm741_vm4  ;;  %vm732_vm10 = vcmp.ge.s32.totalorder (!%p256_p3), %v718_v44, 1  ;;  %vm742_vm11 = vcmp.le.s32.totalorder (!%p256_p3), %v718_v44, 16  ;;  %vm733_vm12 = vcmp.ge.s32.totalorder (!%p256_p3), %v2317_v45, 1  ;;  %p301_p6 = scmp.lt.s32.totalorder (!%p256_p3), %s1843_s8, 31 }
   0xf   : > { %vm2336_vm13 = vmand (!%p256_p3), %vm2320_vm5, %vm760_vm6  ;;  %vm743_vm14 = vcmp.le.s32.totalorder (!%p256_p3), %v2317_v45, 16  ;;  %vm738_vm15 = vcmp.ge.s32.totalorder (!%p256_p3), %v724_v48, 1  ;;  %vm748_vm1 = vcmp.le.s32.totalorder (!%p256_p3), %v724_v48, 16  ;;  %v725_v61 = vadd.s32 (!%p256_p3), 9, %v716_v38 }
  0x10   : > { %s3273_s10 = smov (!%p292_p5, %s291_s10), 35  ;;  %vm2349_vm2 = vmand %vm2327_vm9, %vm760_vm6  ;;  %s3275_s8 = smov (!%p301_p6, %s1843_s8), 31 }
  0x11   : > { %s2067_s12 = smul.u32 24, %s3273_s10  ;;  %vm2364_vm3 = vmand %vm2320_vm5, %vm821_vm8 }
  0x12   : > { %vm2377_vm4 = vmand %vm738_vm15, %vm748_vm1 }
  0x13   : > { %s296_s15 = scalar_lea.vmem %s3176_s0, %s2067_s12  ;;  %vm2395_vm15 = vmand %vm2327_vm9, %vm821_vm8 }
  0x14   : > { %s2232_s16 = scalar_lea.vmem %s296_s15, %s1847_s11  ;;  %s1926_s11 = sshll.u32 %s3275_s8, 4 }
  0x15   : > { %v312_v1 = vld [vmem:[%s2232_s16] sm:$0xff]  ;;  %v313_v2 = vld [vmem:[%s2232_s16 + $0x8] sm:$0xff]  ;;  %v314_v3 = vld [vmem:[%s2232_s16 + $0x10] sm:$0xff]  ;;  %s3098_s24 = scalar_lea.vmem %s3183_s7, %s1926_s11 }
  0x16   : > { %1980 = vmatprep.mubr.msk.f32.mxu0 %vm3184_vm0, %v312_v1  ;;  %v315_v4 = vld [vmem:[%s2232_s16 + $0x18] sm:$0xff]  ;;  %v316_v5 = vld [vmem:[%s2232_s16 + $0x20] sm:$0xff]  ;;  %v317_v6 = vld [vmem:[%s2232_s16 + $0x28] sm:$0xff]  ;;  %v2353_v1 = vadd.s32 4, %v716_v38 }
  0x17   : > { %1981 = vmatmul.mubr.msk.f32.vlgmr.msra.gmra.mrb[0].mxu0 %vm3184_vm0, %v313_v2  ;;  %v336_v7 = vld [vmem:[%s2232_s16 + $0xc0] sm:$0xff]  ;;  %v337_v8 = vld [vmem:[%s2232_s16 + $0xc8] sm:$0xff]  ;;  %v318_v9 = vld [vmem:[%s2232_s16 + $0x30] sm:$0xff]  ;;  %v2355_v2 = vadd.s32 5, %v716_v38 }
  0x18   : > { %1983 = vmatprep.mubr.msk.f32.mxu0 %vm3184_vm0, %v314_v3  ;;  %2016 = vmatprep.mubr.msk.f32.mxu1 %vm3184_vm0, %v336_v7  ;;  %v338_v10 = vld [vmem:[%s2232_s16 + $0xd0] sm:$0xff]  ;;  %v339_v11 = vld [vmem:[%s2232_s16 + $0xd8] sm:$0xff]  ;;  %v340_v13 = vld [vmem:[%s2232_s16 + $0xe0] sm:$0xff]  ;;  %vm744_vm1 = vcmp.le.s32.totalorder %v2353_v1, 16 }
  0x19   : > { %2017 = vmatmul.mubr.msk.f32.vlgmr.msra.gmra.mrb[0].mxu1 %vm3184_vm0, %v337_v8  ;;  %v319_v12 = vld [vmem:[%s2232_s16 + $0x38] sm:$0xff]  ;;  %v320_v14 = vld [vmem:[%s2232_s16 + $0x40] sm:$0xff]  ;;  %v341_v15 = vld [vmem:[%s2232_s16 + $0xe8] sm:$0xff]  ;;  %v2368_v8 = vadd.s32 6, %v716_v38 }
  0x1a   : > { %2019 = vmatprep.mubr.msk.f32.mxu1 %vm3184_vm0, %v338_v10  ;;  %v321_v16 = vld [vmem:[%s2232_s16 + $0x48] sm:$0xff]  ;;  %v322_v17 = vld [vmem:[%s2232_s16 + $0x50] sm:$0xff]  ;;  %v323_v18 = vld [vmem:[%s2232_s16 + $0x58] sm:$0xff]  ;;  %2060 = vmatpush3.bf16.msra.mxu1 %v2057_v33 }
  0x1b   : > { %1984 = vmatmul.mubr.msk.f32.gmra.mrb[2].mxu0 %vm3184_vm0, %v315_v4  ;;  %v324_v19 = vld [vmem:[%s2232_s16 + $0x60] sm:$0xff]  ;;  %v325_v20 = vld [vmem:[%s2232_s16 + $0x68] sm:$0xff]  ;;  %v326_v21 = vld [vmem:[%s2232_s16 + $0x70] sm:$0xff]  ;;  %2062 = vmatprep.subr.bf16.mxu1 %v2061_v36 }
  0x1c   : > { %1986 = vmatprep.mubr.msk.f32.mxu0 %vm3184_vm0, %v316_v5  ;;  %v327_v22 = vld [vmem:[%s2232_s16 + $0x78] sm:$0xff]  ;;  %v328_v23 = vld [vmem:[%s2232_s16 + $0x80] sm:$0xff]  ;;  %v329_v24 = vld [vmem:[%s2232_s16 + $0x88] sm:$0xff] }
  0x1d   : > { %2020 = vmatmul.mubr.msk.f32.gmra.mrb[2].mxu1 %vm3184_vm0, %v339_v11  ;;  %v330_v25 = vld [vmem:[%s2232_s16 + $0x90] sm:$0xff]  ;;  %v331_v26 = vld [vmem:[%s2232_s16 + $0x98] sm:$0xff]  ;;  %v332_v27 = vld [vmem:[%s2232_s16 + $0xa0] sm:$0xff] }
  0x1e   : > { %2022 = vmatprep.mubr.msk.f32.mxu1 %vm3184_vm0, %v340_v13  ;;  %v333_v28 = vld [vmem:[%s2232_s16 + $0xa8] sm:$0xff]  ;;  %v334_v29 = vld [vmem:[%s2232_s16 + $0xb0] sm:$0xff]  ;;  %v335_v30 = vld [vmem:[%s2232_s16 + $0xb8] sm:$0xff]  ;;  %2064 = vmatpush3.bf16.msra.mxu1 %v2061_v36 }
  0x1f   : > { %1987 = vmatmul.mubr.msk.f32.gmra.mrb[4].mxu0 %vm3184_vm0, %v317_v6 }
  0x20   : > { %1989 = vmatprep.mubr.msk.f32.mxu0 %vm3184_vm0, %v318_v9 }
  0x21   : > { %2023 = vmatmul.mubr.msk.f32.gmra.mrb[4].mxu1 %vm3184_vm0, %v341_v15 }
  0x23   : > { %1990 = vmatmul.mubr.msk.f32.gmra.mrb[6].mxu0 %vm3184_vm0, %v319_v12 }
  0x24   : > { %1992 = vmatprep.mubr.msk.f32.mxu0 %vm3184_vm0, %v320_v14  ;;  %v2373_v14 = vadd.s32 7, %v716_v38  ;;  %v2431_v38 = vld [vmem:[%s3179_s3 + $0x1] ss:$0 sm:$0xff] }
  0x27   : > { %1993 = vmatmul.mubr.msk.f32.gmra.mrb[8].mxu0 %vm3184_vm0, %v321_v16 }
  0x28   : > { %1995 = vmatprep.mubr.msk.f32.mxu0 %vm3184_vm0, %v322_v17 }
  0x2b   : > { %1996 = vmatmul.mubr.msk.f32.gmra.mrb[10].mxu0 %vm3184_vm0, %v323_v18 }
  0x2c   : > { %1998 = vmatprep.mubr.msk.f32.mxu0 %vm3184_vm0, %v324_v19 }
  0x2f   : > { %1999 = vmatmul.mubr.msk.f32.gmra.mrb[12].mxu0 %vm3184_vm0, %v325_v20 }
  0x30   : > { %2001 = vmatprep.mubr.msk.f32.mxu0 %vm3184_vm0, %v326_v21 }
  0x33   : > { %2002 = vmatmul.mubr.msk.f32.gmra.mrb[14].mxu0 %vm3184_vm0, %v327_v22 }
  0x34   : > { %2004 = vmatprep.mubr.msk.f32.mxu0 %vm3184_vm0, %v328_v23 }
  0x37   : > { %2005 = vmatmul.mubr.msk.f32.gmra.mrb[16].mxu0 %vm3184_vm0, %v329_v24  ;;  %v2402_v24 = vld [vmem:[%s3179_s3] ss:$0 sm:$0xff] }
  0x38   : > { %2007 = vmatprep.mubr.msk.f32.mxu0 %vm3184_vm0, %v330_v25 }
  0x3b   : > { %2008 = vmatmul.mubr.msk.f32.gmra.mrb[18].mxu0 %vm3184_vm0, %v331_v26 }
  0x3c   : > { %2010 = vmatprep.mubr.msk.f32.mxu0 %vm3184_vm0, %v332_v27 }
  0x3f   : > { %2011 = vmatmul.mubr.msk.f32.gmra.mrb[20].mxu0 %vm3184_vm0, %v333_v28 }
  0x40   : > { %2013 = vmatprep.mubr.msk.f32.mxu0 %vm3184_vm0, %v334_v29 }
  0x43   : > { %2014 = vmatmul.mubr.msk.f32.gmra.mrb[22].mxu0 %vm3184_vm0, %v335_v30 }
  0xea   : > { %v1982_v43 = vpop.f32.mrb[0].mxu0 }
  0xeb   : > { %v513_v46 = vadd.f32 %v1982_v43, %v2312_v41  ;;  %v507_v47 = vpop.f32.mrb[1].mxu0 }
  0xec   : > { %v508_v50 = vadd.f32 %v2312_v41, %v507_v47  ;;  %v2018_v3 = vpop.f32.mrb[0].mxu1  ;;  %v2438_v47 = vld [vmem:[%s3179_s3 + $0x2] ss:$0 sm:$0xff] }
  0xed   : > { %v657_v51 = vmax.f32 %v513_v46, 0.0  ;;  %v633_v9 = vadd.f32 %v2018_v3, %v2312_v41  ;;  %v627_v10 = vpop.f32.mrb[1].mxu1 }
  0xee   : > { %v656_v52 = vmax.f32 %v508_v50, 0.0  ;;  %v1985_v53 = vpop.f32.mrb[2].mxu0  ;;  %v628_v16 = vadd.f32 %v2312_v41, %v627_v10 }
  0xef   : > { %v687_v55 = vmin.f32 %v657_v51, 6.0  ;;  %v523_v57 = vadd.f32 %v1985_v53, %v2312_v41  ;;  %v517_v58 = vpop.f32.mrb[3].mxu0  ;;  %v681_v20 = vmax.f32 %v633_v9, 0.0  ;;  %v2476_v9 = vld [vmem:[%s3179_s3 + $0x3] ss:$0 sm:$0xff] }
  0xf0   : > { %v686_v59 = vmin.f32 %v656_v52, 6.0  ;;  %v518_v60 = vadd.f32 %v2312_v41, %v517_v58  ;;  %v680_v25 = vmax.f32 %v628_v16, 0.0  ;;  %v2021_v26 = vpop.f32.mrb[2].mxu1 }
  0xf1   : > { %v919_v62 = vsel %vm2320_vm5, %v687_v55, 0.0  ;;  %v659_v63 = vmax.f32 %v523_v57, 0.0  ;;  %vm2385_vm5 = vmand %vm732_vm10, %vm742_vm11  ;;  %vm749_vm10 = vcmp.le.s32.totalorder %v725_v61, 16  ;;  %v711_v30 = vmin.f32 %v681_v20, 6.0  ;;  %v637_v33 = vpop.f32.mrb[3].mxu1 }
  0xf2   : > { %950 = vst.msk [vmem:[#allocation2 + $0x8] sm:$0xff] %vm948_vm7, %v919_v62  ;;  %v918_v4 = vsel %vm2336_vm13, %v686_v59, 0.0  ;;  %v658_v5 = vmax.f32 %v518_v60, 0.0  ;;  %v1988_v7 = vpop.f32.mrb[4].mxu0  ;;  %vm739_vm13 = vcmp.ge.s32.totalorder %v725_v61, 1  ;;  %v643_v32 = vadd.f32 %v2021_v26, %v2312_v41  ;;  %vm2454_vm11 = vmand %vm733_vm12, %vm743_vm14 }
  0xf3   : > { %949 = vst.msk [vmem:[#allocation2] sm:$0xff] %vm948_vm7, %v918_v4  ;;  %v689_v11 = vmin.f32 %v659_v63, 6.0  ;;  %v533_v12 = vadd.f32 %v1988_v7, %v2312_v41  ;;  %v527_v13 = vpop.f32.mrb[5].mxu0  ;;  %v710_v40 = vmin.f32 %v680_v25, 6.0  ;;  %v638_v43 = vadd.f32 %v2312_v41, %v637_v33  ;;  %vm2444_vm0 = vmand %vm739_vm13, %vm749_vm10  ;;  %v2604_v25 = vld [vmem:[%s3179_s3 + $0x7] ss:$0 sm:$0xff] }
  0xf4   : > { %v688_v17 = vmin.f32 %v658_v5, 6.0  ;;  %v528_v18 = vadd.f32 %v2312_v41, %v527_v13  ;;  %v943_v48 = vsel %vm2377_vm4, %v711_v30, 0.0  ;;  %v683_v49 = vmax.f32 %v643_v32, 0.0  ;;  %v2024_v58 = vpop.f32.mrb[4].mxu1  ;;  %vm2496_vm13 = vmand %vm2377_vm4, %vm821_vm8 }
  0xf5   : > { %v921_v21 = vsel %vm2349_vm2, %v689_v11, 0.0  ;;  %v661_v22 = vmax.f32 %v533_v12, 0.0  ;;  %vm2413_vm2 = vmand %vm2377_vm4, %vm760_vm6  ;;  %974 = vst.msk [vmem:[#allocation2 + $0xc8] sm:$0xff] %vm948_vm7, %v943_v48  ;;  %v682_v57 = vmax.f32 %v638_v43, 0.0  ;;  %v2467_v3 = vadd.f32 %v2024_v58, %v2312_v41  ;;  %v647_v11 = vpop.f32.mrb[5].mxu1 }
  0xf6   : > { %952 = vst.msk [vmem:[#allocation2 + $0x18] sm:$0xff] %vm948_vm7, %v921_v21  ;;  %v920_v27 = vsel %vm2364_vm3, %v688_v17, 0.0  ;;  %v660_v28 = vmax.f32 %v528_v18, 0.0  ;;  %v1991_v29 = vpop.f32.mrb[6].mxu0  ;;  %vm2424_vm3 = vmand %vm2385_vm5, %vm760_vm6  ;;  %v942_v56 = vsel %vm2413_vm2, %v710_v40, 0.0  ;;  %vm735_vm12 = vcmp.ge.s32.totalorder %v2355_v2, 1 }
  0xf7   : > { %951 = vst.msk [vmem:[#allocation2 + $0x10] sm:$0xff] %vm948_vm7, %v920_v27  ;;  %v691_v34 = vmin.f32 %v661_v22, 6.0  ;;  %v543_v35 = vadd.f32 %v1991_v29, %v2312_v41  ;;  %v537_v36 = vpop.f32.mrb[7].mxu0  ;;  %973 = vst.msk [vmem:[#allocation2 + $0xc0] sm:$0xff] %vm948_vm7, %v942_v56  ;;  %vm745_vm14 = vcmp.le.s32.totalorder %v2355_v2, 16  ;;  %v713_v17 = vmin.f32 %v683_v49, 6.0 }
  0xf8   : > { %v690_v44 = vmin.f32 %v660_v28, 6.0  ;;  %v538_v46 = vadd.f32 %v2312_v41, %v537_v36  ;;  %v712_v23 = vmin.f32 %v682_v57, 6.0  ;;  %vm2519_vm4 = vmand %vm2385_vm5, %vm821_vm8  ;;  %v2543_v48 = vld [vmem:[%s3179_s3 + $0x5] ss:$0 sm:$0xff] }
  0xf9   : > { %v980_v51 = vld [vmem:[#allocation2 + $0x8] sm:$0xff]  ;;  %v923_v52 = vsel %vm2395_vm15, %v691_v34, 0.0  ;;  %v663_v53 = vmax.f32 %v543_v35, 0.0  ;;  %vm2507_vm15 = vmand %vm2454_vm11, %vm760_vm6 }
  0xfa   : > { %954 = vst.msk [vmem:[#allocation2 + $0x28] sm:$0xff] %vm948_vm7, %v923_v52  ;;  %v922_v59 = vsel %vm2327_vm9, %v690_v44, 0.0  ;;  %v662_v60 = vmax.f32 %v538_v46, 0.0  ;;  %v1994_v61 = vpop.f32.mrb[8].mxu0  ;;  %v979_v62 = vld [vmem:[#allocation2] sm:$0xff]  ;;  %v1001_v0 = vmul.f32 %v2402_v24, %v980_v51  ;;  %vm2482_vm9 = vmand %vm2444_vm0, %vm760_vm6  ;;  %v944_v51 = vsel %vm2496_vm13, %v712_v23, 0.0 }
  0xfb   : > { %v1016_v45 = vld [vmem:[#allocation2 + $0x1] sm:$0xff]  ;;  %953 = vst.msk [vmem:[#allocation2 + $0x20] sm:$0xff] %vm948_vm7, %v922_v59  ;;  %v693_v4 = vmin.f32 %v663_v53, 6.0  ;;  %v553_v5 = vadd.f32 %v1994_v61, %v2312_v41  ;;  %v547_v6 = vpop.f32.mrb[9].mxu0  ;;  %v1000_v54 = vmul.f32 %v2402_v24, %v979_v62  ;;  %v945_v32 = vsel %vm2482_vm9, %v713_v17, 0.0  ;;  %vm2530_vm10 = vmand %vm2454_vm11, %vm821_vm8 }
  0xfc   : > { %v1069_v63 = vld [vmem:[#allocation2 + $0x2] sm:$0xff]  ;;  %v1037_v7 = vmul.f32 %v2431_v38, %v1016_v45  ;;  %v692_v12 = vmin.f32 %v662_v60, 6.0  ;;  %v548_v13 = vadd.f32 %v2312_v41, %v547_v6  ;;  %976 = vst.msk [vmem:[#allocation2 + $0xd8] sm:$0xff] %vm948_vm7, %v945_v32  ;;  %975 = vst.msk [vmem:[#allocation2 + $0xd0] sm:$0xff] %vm948_vm7, %v944_v51  ;;  %vm737_vm13 = vcmp.ge.s32.totalorder %v2373_v14, 1 }
  0xfd   : > { %v1090_v16 = vmul.f32 %v2438_v47, %v1069_v63  ;;  %v925_v18 = vsel %vm2385_vm5, %v693_v4, 0.0  ;;  %v665_v20 = vmax.f32 %v553_v5, 0.0  ;;  %v1123_v22 = vld [vmem:[#allocation2 + $0x18] sm:$0xff]  ;;  %v2538_v46 = vld [vmem:[%s3179_s3 + $0x4] ss:$0 sm:$0xff]  ;;  %vm3219_vm5 = vcmp.ge.s32.totalorder %v2353_v1, 1 }
  0xfe   : > { %v1053_v21 = vadd.f32 %v1037_v7, %v1000_v54  ;;  %v1017_v26 = vld [vmem:[#allocation2 + $0x9] sm:$0xff]  ;;  %956 = vst.msk [vmem:[#allocation2 + $0x38] sm:$0xff] %vm948_vm7, %v925_v18  ;;  %v924_v27 = vsel %vm2424_vm3, %v692_v12, 0.0  ;;  %v664_v29 = vmax.f32 %v548_v13, 0.0  ;;  %v1997_v15 = vpop.f32.mrb[10].mxu0  ;;  %v1144_v30 = vmul.f32 %v2476_v9, %v1123_v22  ;;  %vm2554_vm2 = vmand %vm3219_vm5, %vm744_vm1 }
  0xff   : > { %v1070_v31 = vld [vmem:[#allocation2 + $0xa] sm:$0xff]  ;;  %955 = vst.msk [vmem:[#allocation2 + $0x30] sm:$0xff] %vm948_vm7, %v924_v27  ;;  %v695_v33 = vmin.f32 %v665_v20, 6.0  ;;  %v563_v35 = vadd.f32 %v1997_v15, %v2312_v41  ;;  %v557_v36 = vpop.f32.mrb[11].mxu0  ;;  %v1038_v40 = vmul.f32 %v2431_v38, %v1017_v26  ;;  %v2567_v1 = vmul.f32 %v2402_v24, %v1123_v22  ;;  %vm2597_vm9 = vmand %vm2554_vm2, %vm760_vm6  ;;  %v2609_v26 = vld [vmem:[%s3179_s3 + $0x8] ss:$0 sm:$0xff] }
 0x100   : > { %v1106_v37 = vadd.f32 %v1090_v16, %v1053_v21  ;;  %v694_v43 = vmin.f32 %v664_v29, 6.0  ;;  %v558_v19 = vadd.f32 %v2312_v41, %v557_v36  ;;  %v1091_v49 = vmul.f32 %v2438_v47, %v1070_v31 }
 0x101   : > { %v927_v52 = vsel %vm2507_vm15, %v695_v33, 0.0  ;;  %v667_v53 = vmax.f32 %v563_v35, 0.0  ;;  %v1054_v58 = vadd.f32 %v1038_v40, %v1001_v0  ;;  %v2570_v4 = vadd.f32 %v2312_v41, %v647_v11  ;;  %v2587_v11 = vld [vmem:[%s3179_s3 + $0x6] ss:$0 sm:$0xff] }
 0x102   : > { %v1160_v57 = vadd.f32 %v1144_v30, %v1106_v37  ;;  %958 = vst.msk [vmem:[#allocation2 + $0x48] sm:$0xff] %vm948_vm7, %v927_v52  ;;  %v926_v59 = vsel %vm2519_vm4, %v694_v43, 0.0  ;;  %v666_v60 = vmax.f32 %v558_v19, 0.0  ;;  %v2000_v61 = vpop.f32.mrb[12].mxu0  ;;  %v1176_v62 = vld [vmem:[#allocation2 + $0x19] sm:$0xff]  ;;  %v2577_v10 = vld [vmem:[#allocation2 + $0x21] sm:$0xff] }
 0x103   : > { %v2562_v45 = vld [vmem:[#allocation2 + $0x1a] sm:$0xff]  ;;  %957 = vst.msk [vmem:[#allocation2 + $0x40] sm:$0xff] %vm948_vm7, %v926_v59  ;;  %v697_v0 = vmin.f32 %v667_v53, 6.0  ;;  %v573_v5 = vadd.f32 %v2000_v61, %v2312_v41  ;;  %v567_v6 = vpop.f32.mrb[13].mxu0  ;;  %v1197_v54 = vmul.f32 %v2538_v46, %v1176_v62  ;;  %v2579_v12 = vld [vmem:[#allocation2 + $0x22] sm:$0xff]  ;;  %vm736_vm1 = vcmp.ge.s32.totalorder %v2368_v8, 1 }
 0x104   : > { %v2564_v63 = vld [vmem:[#allocation2 + $0x20] sm:$0xff]  ;;  %v1250_v7 = vmul.f32 %v2543_v48, %v2562_v45  ;;  %v696_v13 = vmin.f32 %v666_v60, 6.0  ;;  %v568_v16 = vadd.f32 %v2312_v41, %v567_v6  ;;  %vm746_vm3 = vcmp.le.s32.totalorder %v2368_v8, 16 }
 0x105   : > { %v1107_v17 = vadd.f32 %v1091_v49, %v1054_v58  ;;  %v1145_v18 = vmul.f32 %v2476_v9, %v2564_v63  ;;  %v929_v20 = vsel %vm2530_vm10, %v697_v0, 0.0  ;;  %v669_v21 = vmax.f32 %v573_v5, 0.0  ;;  %v2636_v44 = vld [vmem:[#allocation2 + $0x38] sm:$0xff]  ;;  %vm2707_vm10 = vmand %vm736_vm1, %vm746_vm3 }
 0x106   : > { %v1213_v23 = vadd.f32 %v1197_v54, %v1160_v57  ;;  %v1198_v27 = vmul.f32 %v2538_v46, %v2577_v10  ;;  %960 = vst.msk [vmem:[#allocation2 + $0x58] sm:$0xff] %vm948_vm7, %v929_v20  ;;  %v928_v28 = vsel %vm2454_vm11, %v696_v13, 0.0  ;;  %v668_v29 = vmax.f32 %v568_v16, 0.0  ;;  %v2003_v15 = vpop.f32.mrb[14].mxu0  ;;  %v2616_v30 = vld [vmem:[#allocation2 + $0x30] sm:$0xff]  ;;  %vm2630_vm11 = vmand %vm735_vm12, %vm745_vm14 }
 0x107   : > { %v2618_v31 = vld [vmem:[#allocation2 + $0x31] sm:$0xff]  ;;  %v1161_v33 = vadd.f32 %v1145_v18, %v1107_v17  ;;  %v1251_v34 = vmul.f32 %v2543_v48, %v2579_v12  ;;  %959 = vst.msk [vmem:[#allocation2 + $0x50] sm:$0xff] %vm948_vm7, %v928_v28  ;;  %v699_v35 = vmin.f32 %v669_v21, 6.0  ;;  %v583_v36 = vadd.f32 %v2003_v15, %v2312_v41  ;;  %v577_v37 = vpop.f32.mrb[15].mxu0  ;;  %vm2654_vm12 = vmand %vm2630_vm11, %vm760_vm6 }
 0x108   : > { %v2620_v32 = vld [vmem:[#allocation2 + $0x32] sm:$0xff]  ;;  %v1266_v40 = vadd.f32 %v1250_v7, %v1213_v23  ;;  %v1304_v43 = vmul.f32 %v2587_v11, %v2616_v30  ;;  %v698_v19 = vmin.f32 %v668_v29, 6.0  ;;  %v578_v49 = vadd.f32 %v2312_v41, %v577_v37  ;;  %vm2670_vm14 = vmand %vm2554_vm2, %vm821_vm8 }
 0x109   : > { %vm747_vm15 = vcmp.le.s32.totalorder %v2373_v14, 16  ;;  %v1357_v2 = vmul.f32 %v2604_v25, %v2618_v31  ;;  %v1410_v51 = vmul.f32 %v2609_v26, %v2620_v32  ;;  %v931_v52 = vsel %vm2554_vm2, %v699_v35, 0.0  ;;  %vm2694_vm4 = vmand %vm2630_vm11, %vm821_vm8 }
 0x10a   : > { %v671_v53 = vmax.f32 %v583_v36, 0.0  ;;  %v1320_v57 = vadd.f32 %v1304_v43, %v1266_v40  ;;  %v1214_v58 = vadd.f32 %v1198_v27, %v1161_v33  ;;  %962 = vst.msk [vmem:[#allocation2 + $0x68] sm:$0xff] %vm948_vm7, %v931_v52  ;;  %v930_v59 = vsel %vm2597_vm9, %v698_v19, 0.0  ;;  %v2006_v0 = vpop.f32.mrb[16].mxu0  ;;  %v2660_v6 = vld [vmem:[#allocation2 + $0x39] sm:$0xff]  ;;  %vm2724_vm5 = vmand %vm2707_vm10, %vm760_vm6 }
 0x10b   : > { %v670_v61 = vmax.f32 %v578_v49, 0.0  ;;  %v1305_v5 = vmul.f32 %v2587_v11, %v2636_v44  ;;  %v2662_v54 = vld [vmem:[#allocation2 + $0x3a] sm:$0xff]  ;;  %v1039_v7 = vmul.f32 %v2431_v38, %v1176_v62  ;;  %961 = vst.msk [vmem:[#allocation2 + $0x60] sm:$0xff] %vm948_vm7, %v930_v59  ;;  %v593_v17 = vadd.f32 %v2006_v0, %v2312_v41  ;;  %v587_v18 = vpop.f32.mrb[17].mxu0  ;;  %vm2738_vm2 = vmand %vm737_vm13, %vm747_vm15 }
 0x10c   : > { %v701_v13 = vmin.f32 %v671_v53, 6.0  ;;  %v1373_v20 = vadd.f32 %v1357_v2, %v1320_v57  ;;  %v1267_v21 = vadd.f32 %v1251_v34, %v1214_v58  ;;  %v588_v23 = vadd.f32 %v2312_v41, %v587_v18  ;;  %v2679_v62 = vld [vmem:[%s3180_s4] ss:$0 sm:$0xff]  ;;  %v2730_v18 = vld [vmem:[#allocation2 + $0x48] sm:$0xff]  ;;  %vm2762_vm1 = vmand %vm2738_vm2, %vm760_vm6 }
 0x10d   : > { %v700_v22 = vmin.f32 %v670_v61, 6.0  ;;  %v1358_v56 = vmul.f32 %v2604_v25, %v2660_v6  ;;  %v1411_v27 = vmul.f32 %v2609_v26, %v2662_v54  ;;  %v673_v29 = vmax.f32 %v593_v17, 0.0  ;;  %vm2773_vm3 = vmand %vm2707_vm10, %vm821_vm8 }
 0x10e   : > { %v933_v28 = vsel %vm2654_vm12, %v701_v13, 0.0  ;;  %v1426_v15 = vadd.f32 %v1410_v51, %v1373_v20  ;;  %v1321_v33 = vadd.f32 %v1305_v5, %v1267_v21  ;;  %v672_v36 = vmax.f32 %v588_v23, 0.0  ;;  %v2009_v37 = vpop.f32.mrb[18].mxu0  ;;  %vm2789_vm6 = vmand %vm2444_vm0, %vm821_vm8 }
 0x10f   : > { %964 = vst.msk [vmem:[#allocation2 + $0x78] sm:$0xff] %vm948_vm7, %v933_v28  ;;  %v932_v34 = vsel %vm2670_vm14, %v700_v22, 0.0  ;;  %v1055_v40 = vadd.f32 %v1039_v7, %v2567_v1  ;;  %v1092_v43 = vmul.f32 %v2438_v47, %v2562_v45  ;;  %v703_v19 = vmin.f32 %v673_v29, 6.0  ;;  %v597_v51 = vpop.f32.mrb[19].mxu0  ;;  %vm2803_vm9 = vmand %vm2738_vm2, %vm821_vm8 }
 0x110   : > { %963 = vst.msk [vmem:[#allocation2 + $0x70] sm:$0xff] %vm948_vm7, %v932_v34  ;;  %v603_v49 = vadd.f32 %v2009_v37, %v2312_v41  ;;  %v1449_v52 = vadd.f32 %v2679_v62, %v1426_v15  ;;  %v1374_v1 = vadd.f32 %v1358_v56, %v1321_v33  ;;  %v702_v53 = vmin.f32 %v672_v36, 6.0  ;;  %v2748_v34 = vld [vmem:[#allocation2 + $0x4a] sm:$0xff] }
 0x111   : > { %v598_v45 = vadd.f32 %v2312_v41, %v597_v51  ;;  %v1108_v57 = vadd.f32 %v1092_v43, %v1055_v40  ;;  %v1146_v58 = vmul.f32 %v2476_v9, %v2616_v30  ;;  %v935_v59 = vsel %vm2694_vm4, %v703_v19, 0.0 }
 0x112   : > { %v675_v60 = vmax.f32 %v603_v49, 0.0  ;;  %v1465_v8 = vmax.f32 %v1449_v52, 0.0  ;;  %v1427_v61 = vadd.f32 %v1411_v27, %v1374_v1  ;;  %966 = vst.msk [vmem:[#allocation2 + $0x88] sm:$0xff] %vm948_vm7, %v935_v59  ;;  %v934_v0 = vsel %vm2630_vm11, %v702_v53, 0.0  ;;  %v2012_v13 = vpop.f32.mrb[20].mxu0  ;;  %v2743_v27 = vld [vmem:[#allocation2 + $0x49] sm:$0xff] }
 0x113   : > { %v674_v5 = vmax.f32 %v598_v45, 0.0  ;;  %v1162_v16 = vadd.f32 %v1146_v58, %v1108_v57  ;;  %v1199_v17 = vmul.f32 %v2538_v46, %v2618_v31  ;;  %965 = vst.msk [vmem:[#allocation2 + $0x80] sm:$0xff] %vm948_vm7, %v934_v0  ;;  %v613_v20 = vadd.f32 %v2012_v13, %v2312_v41  ;;  %v607_v22 = vpop.f32.mrb[21].mxu0 }
 0x114   : > { %v705_v55 = vmin.f32 %v675_v60, 6.0  ;;  %v1481_v23 = vmin.f32 %v1465_v8, 6.0  ;;  %v1450_v56 = vadd.f32 %v2679_v62, %v1427_v61  ;;  %v608_v29 = vadd.f32 %v2312_v41, %v607_v22 }
 0x115   : > { %v704_v28 = vmin.f32 %v674_v5, 6.0  ;;  %v1215_v15 = vadd.f32 %v1199_v17, %v1162_v16  ;;  %v1252_v33 = vmul.f32 %v2543_v48, %v2620_v32  ;;  %v677_v35 = vmax.f32 %v613_v20, 0.0 }
 0x116   : > { %v937_v14 = vsel %vm2707_vm10, %v705_v55, 0.0  ;;  %2033 = vmatprep.mubr.msk.f32.mxu1 %vm948_vm7, %v1481_v23  ;;  %v1466_v36 = vmax.f32 %v1450_v56, 0.0  ;;  %v1306_v37 = vmul.f32 %v2587_v11, %v2730_v18  ;;  %v676_v19 = vmax.f32 %v608_v29, 0.0  ;;  %v2015_v49 = vpop.f32.mrb[22].mxu0 }
 0x117   : > { %968 = vst.msk [vmem:[#allocation2 + $0x98] sm:$0xff] %vm948_vm7, %v937_v14  ;;  %v936_v40 = vsel %vm2724_vm5, %v704_v28, 0.0  ;;  %v1268_v51 = vadd.f32 %v1252_v33, %v1215_v15  ;;  %v1359_v52 = vmul.f32 %v2604_v25, %v2743_v27  ;;  %v707_v1 = vmin.f32 %v677_v35, 6.0  ;;  %v617_v45 = vpop.f32.mrb[23].mxu0  ;;  %v1286_v33 = vld [vmem:[#allocation2 + $0x50] sm:$0xff] }
 0x118   : > { %967 = vst.msk [vmem:[#allocation2 + $0x90] sm:$0xff] %vm948_vm7, %v936_v40  ;;  %v623_v53 = vadd.f32 %v2015_v49, %v2312_v41  ;;  %v1482_v57 = vmin.f32 %v1466_v36, 6.0  ;;  %v1412_v58 = vmul.f32 %v2609_v26, %v2748_v34  ;;  %v706_v59 = vmin.f32 %v676_v19, 6.0  ;;  %v2826_v35 = vld [vmem:[#allocation2 + $0x51] sm:$0xff] }
 0x119   : > { %v618_v60 = vadd.f32 %v2312_v41, %v617_v45  ;;  %v1322_v8 = vadd.f32 %v1306_v37, %v1268_v51  ;;  %v685_v61 = vmax.f32 %v2467_v3, 0.0  ;;  %v939_v2 = vsel %vm2762_vm1, %v707_v1, 0.0  ;;  %v2828_v36 = vld [vmem:[#allocation2 + $0x52] sm:$0xff]  ;;  %v2850_v45 = vld [vmem:[#allocation2 + $0x62] sm:$0xff] }
 0x11a   : > { %v679_v0 = vmax.f32 %v623_v53, 0.0  ;;  %2034 = vmatmul.mubr.msk.f32.vlgmr.msra.gmra.mrb[6].mxu1 %vm948_vm7, %v1482_v57  ;;  %v684_v7 = vmax.f32 %v2570_v4, 0.0  ;;  %v1003_v41 = vmul.f32 %v2402_v24, %v2564_v63  ;;  %970 = vst.msk [vmem:[#allocation2 + $0xa8] sm:$0xff] %vm948_vm7, %v939_v2  ;;  %v938_v3 = vsel %vm2773_vm3, %v706_v59, 0.0  ;;  %v2848_v53 = vld [vmem:[#allocation2 + $0x61] sm:$0xff] }
 0x11b   : > { %v678_v16 = vmax.f32 %v618_v60, 0.0  ;;  %v1375_v17 = vadd.f32 %v1359_v52, %v1322_v8  ;;  %v715_v55 = vmin.f32 %v685_v61, 6.0  ;;  %969 = vst.msk [vmem:[#allocation2 + $0xa0] sm:$0xff] %vm948_vm7, %v938_v3  ;;  %v1040_v20 = vmul.f32 %v2431_v38, %v2577_v10 }
 0x11c   : > { %v709_v4 = vmin.f32 %v679_v0, 6.0  ;;  %v714_v63 = vmin.f32 %v684_v7, 6.0  ;;  %v1093_v56 = vmul.f32 %v2438_v47, %v2579_v12  ;;  %v1147_v10 = vmul.f32 %v2476_v9, %v2636_v44 }
 0x11d   : > { %v708_v22 = vmin.f32 %v678_v16, 6.0  ;;  %v1428_v23 = vadd.f32 %v1412_v58, %v1375_v17  ;;  %v947_v42 = vsel %vm2789_vm6, %v715_v55, 0.0  ;;  %v1056_v15 = vadd.f32 %v1040_v20, %v1003_v41  ;;  %v2869_v41 = vld [vmem:[#allocation2 + $0x68] sm:$0xff] }
 0x11e   : > { %v941_v28 = vsel %vm2803_vm9, %v709_v4, 0.0  ;;  %978 = vst.msk [vmem:[#allocation2 + $0xe8] sm:$0xff] %vm948_vm7, %v947_v42  ;;  %v946_v29 = vsel %vm2444_vm0, %v714_v63, 0.0  ;;  %v1200_v37 = vmul.f32 %v2538_v46, %v2660_v6  ;;  %v1004_v40 = vmul.f32 %v2402_v24, %v2616_v30  ;;  %v2846_v30 = vld [vmem:[#allocation2 + $0x60] sm:$0xff]  ;;  %v2876_v55 = vld [vmem:[#allocation2 + $0x69] sm:$0xff] }
 0x11f   : > { %972 = vst.msk [vmem:[#allocation2 + $0xb8] sm:$0xff] %vm948_vm7, %v941_v28  ;;  %v940_v14 = vsel %vm2738_vm2, %v708_v22, 0.0  ;;  %v1451_v12 = vadd.f32 %v2679_v62, %v1428_v23  ;;  %977 = vst.msk [vmem:[#allocation2 + $0xe0] sm:$0xff] %vm948_vm7, %v946_v29  ;;  %v1109_v50 = vadd.f32 %v1093_v56, %v1056_v15  ;;  %v1253_v21 = vmul.f32 %v2543_v48, %v2662_v54  ;;  %v2878_v4 = vld [vmem:[#allocation2 + $0x6a] sm:$0xff] }
 0x120   : > { %971 = vst.msk [vmem:[#allocation2 + $0xb0] sm:$0xff] %vm948_vm7, %v940_v14  ;;  %v1307_v19 = vmul.f32 %v2587_v11, %v1286_v33  ;;  %v1041_v49 = vmul.f32 %v2431_v38, %v2618_v31  ;;  %v1360_v52 = vmul.f32 %v2604_v25, %v2826_v35  ;;  %v1413_v1 = vmul.f32 %v2609_v26, %v2828_v36 }
 0x121   : > { %v1467_v43 = vmax.f32 %v1451_v12, 0.0  ;;  %v1163_v51 = vadd.f32 %v1147_v10, %v1109_v50  ;;  %v1094_v39 = vmul.f32 %v2438_v47, %v2620_v32  ;;  %v1148_v31 = vmul.f32 %v2476_v9, %v2730_v18  ;;  %v2896_v12 = vld [vmem:[#allocation2 + $0x78] sm:$0xff] }
 0x122   : > { %v1057_v58 = vadd.f32 %v1041_v49, %v1004_v40  ;;  %v1201_v59 = vmul.f32 %v2538_v46, %v2743_v27  ;;  %v1254_v8 = vmul.f32 %v2543_v48, %v2748_v34  ;;  %v1005_v32 = vmul.f32 %v2402_v24, %v2636_v44  ;;  %v2903_v49 = vld [vmem:[#allocation2 + $0x79] sm:$0xff] }
 0x123   : > { %v1483_v57 = vmin.f32 %v1467_v43, 6.0  ;;  %v1216_v60 = vadd.f32 %v1200_v37, %v1163_v51  ;;  %v1042_v61 = vmul.f32 %v2431_v38, %v2660_v6  ;;  %v1308_v0 = vmul.f32 %v2587_v11, %v2846_v30  ;;  %v2905_v51 = vld [vmem:[#allocation2 + $0x7a] sm:$0xff] }
 0x124   : > { %v1110_v2 = vadd.f32 %v1094_v39, %v1057_v58  ;;  %v1361_v5 = vmul.f32 %v2604_v25, %v2848_v53  ;;  %v1414_v7 = vmul.f32 %v2609_v26, %v2850_v45  ;;  %v1095_v44 = vmul.f32 %v2438_v47, %v2662_v54 }
 0x125   : > { %2036 = vmatprep.mubr.msk.f32.mxu1 %vm948_vm7, %v1483_v57  ;;  %v1269_v3 = vadd.f32 %v1253_v21, %v1216_v60  ;;  %v1058_v13 = vadd.f32 %v1042_v61, %v1005_v32  ;;  %v1149_v6 = vmul.f32 %v2476_v9, %v1286_v33  ;;  %v1202_v17 = vmul.f32 %v2538_v46, %v2826_v35 }
 0x126   : > { %v1164_v16 = vadd.f32 %v1148_v31, %v1110_v2  ;;  %v1006_v63 = vmul.f32 %v2402_v24, %v2730_v18  ;;  %v1043_v20 = vmul.f32 %v2431_v38, %v2743_v27  ;;  %v1255_v54 = vmul.f32 %v2543_v48, %v2828_v36 }
 0x127   : > { %v1323_v22 = vadd.f32 %v1307_v19, %v1269_v3  ;;  %v1111_v23 = vadd.f32 %v1095_v44, %v1058_v13  ;;  %v1309_v42 = vmul.f32 %v2587_v11, %v2869_v41  ;;  %v1096_v29 = vmul.f32 %v2438_v47, %v2748_v34 }
 0x128   : > { %v1217_v56 = vadd.f32 %v1201_v59, %v1164_v16  ;;  %v1059_v28 = vadd.f32 %v1043_v20, %v1006_v63  ;;  %v1150_v15 = vmul.f32 %v2476_v9, %v2846_v30  ;;  %v1362_v27 = vmul.f32 %v2604_v25, %v2876_v55 }
 0x129   : > { %v1376_v18 = vadd.f32 %v1360_v52, %v1323_v22  ;;  %v1165_v10 = vadd.f32 %v1149_v6, %v1111_v23  ;;  %v1415_v14 = vmul.f32 %v2609_v26, %v2878_v4  ;;  %v1203_v40 = vmul.f32 %v2538_v46, %v2848_v53  ;;  %v2922_v6 = vld [vmem:[#allocation2 + $0x80] sm:$0xff] }
 0x12a   : > { %v1270_v50 = vadd.f32 %v1254_v8, %v1217_v56  ;;  %v1112_v37 = vadd.f32 %v1096_v29, %v1059_v28  ;;  %v1007_v34 = vmul.f32 %v2402_v24, %v1286_v33  ;;  %v1256_v19 = vmul.f32 %v2543_v48, %v2850_v45 }
 0x12b   : > { %v1429_v43 = vadd.f32 %v1413_v1, %v1376_v18  ;;  %v1218_v21 = vadd.f32 %v1202_v17, %v1165_v10  ;;  %v1044_v52 = vmul.f32 %v2431_v38, %v2826_v35  ;;  %v1310_v58 = vmul.f32 %v2587_v11, %v2896_v12 }
 0x12c   : > { %v1324_v39 = vadd.f32 %v1308_v0, %v1270_v50  ;;  %v1166_v57 = vadd.f32 %v1150_v15, %v1112_v37  ;;  %v1097_v33 = vmul.f32 %v2438_v47, %v2828_v36  ;;  %v1151_v60 = vmul.f32 %v2476_v9, %v2869_v41 }
 0x12d   : > { %v1452_v1 = vadd.f32 %v2679_v62, %v1429_v43  ;;  %v1271_v31 = vadd.f32 %v1255_v54, %v1218_v21  ;;  %v1060_v59 = vadd.f32 %v1044_v52, %v1007_v34  ;;  %v1363_v35 = vmul.f32 %v2604_v25, %v2903_v49  ;;  %v2949_v34 = vld [vmem:[#allocation2 + $0x90] sm:$0xff] }
 0x12e   : > { %v1377_v8 = vadd.f32 %v1361_v5, %v1324_v39  ;;  %v1219_v32 = vadd.f32 %v1203_v40, %v1166_v57  ;;  %v1416_v61 = vmul.f32 %v2609_v26, %v2905_v51  ;;  %v1204_v36 = vmul.f32 %v2538_v46, %v2876_v55 }
 0x12f   : > { %v1468_v2 = vmax.f32 %v1452_v1, 0.0  ;;  %v1325_v0 = vadd.f32 %v1309_v42, %v1271_v31  ;;  %v1113_v3 = vadd.f32 %v1097_v33, %v1060_v59  ;;  %v1008_v5 = vmul.f32 %v2402_v24, %v2846_v30  ;;  %v2931_v42 = vld [vmem:[#allocation2 + $0x81] sm:$0xff] }
 0x130   : > { %v1430_v13 = vadd.f32 %v1414_v7, %v1377_v8  ;;  %v1272_v44 = vadd.f32 %v1256_v19, %v1219_v32  ;;  %v1045_v16 = vmul.f32 %v2431_v38, %v2848_v53  ;;  %v1098_v22 = vmul.f32 %v2438_v47, %v2850_v45  ;;  %v2933_v7 = vld [vmem:[#allocation2 + $0x82] sm:$0xff]  ;;  %v2961_v8 = vld [vmem:[#allocation2 + $0x92] sm:$0xff] }
 0x131   : > { %v1484_v17 = vmin.f32 %v1468_v2, 6.0  ;;  %v1378_v63 = vadd.f32 %v1362_v27, %v1325_v0  ;;  %v1167_v20 = vadd.f32 %v1151_v60, %v1113_v3  ;;  %v1152_v30 = vmul.f32 %v2476_v9, %v2896_v12  ;;  %v1344_v60 = vld [vmem:[#allocation2 + $0x91] sm:$0xff] }
 0x132   : > { %v1453_v23 = vadd.f32 %v2679_v62, %v1430_v13  ;;  %v1326_v54 = vadd.f32 %v1310_v58, %v1272_v44  ;;  %v1061_v56 = vadd.f32 %v1045_v16, %v1008_v5  ;;  %v1257_v29 = vmul.f32 %v2543_v48, %v2878_v4 }
 0x133   : > { %2037 = vmatmul.mubr.msk.f32.gmra.mrb[8].mxu1 %vm948_vm7, %v1484_v17  ;;  %v1431_v53 = vadd.f32 %v1415_v14, %v1378_v63  ;;  %v1220_v28 = vadd.f32 %v1204_v36, %v1167_v20  ;;  %v1311_v45 = vmul.f32 %v2587_v11, %v2922_v6  ;;  %v1205_v27 = vmul.f32 %v2538_v46, %v2903_v49  ;;  %v2973_v17 = vld [vmem:[#allocation2 + $0x99] sm:$0xff] }
 0x134   : > { %v1469_v15 = vmax.f32 %v1453_v23, 0.0  ;;  %v1379_v18 = vadd.f32 %v1363_v35, %v1326_v54  ;;  %v1114_v10 = vadd.f32 %v1098_v22, %v1061_v56  ;;  %v1364_v40 = vmul.f32 %v2604_v25, %v2931_v42 }
 0x135   : > { %v1454_v50 = vadd.f32 %v2679_v62, %v1431_v53  ;;  %v1273_v37 = vadd.f32 %v1257_v29, %v1220_v28  ;;  %v1417_v14 = vmul.f32 %v2609_v26, %v2933_v7  ;;  %v1258_v52 = vmul.f32 %v2543_v48, %v2905_v51 }
 0x136   : > { %v1485_v43 = vmin.f32 %v1469_v15, 6.0  ;;  %v1432_v21 = vadd.f32 %v1416_v61, %v1379_v18  ;;  %v1168_v19 = vadd.f32 %v1152_v30, %v1114_v10  ;;  %v1009_v58 = vmul.f32 %v2402_v24, %v2869_v41  ;;  %v1398_v10 = vld [vmem:[#allocation2 + $0x9a] sm:$0xff] }
 0x137   : > { %v1470_v39 = vmax.f32 %v1454_v50, 0.0  ;;  %v1327_v57 = vadd.f32 %v1311_v45, %v1273_v37  ;;  %v1046_v33 = vmul.f32 %v2431_v38, %v2876_v55  ;;  %v1312_v59 = vmul.f32 %v2587_v11, %v2949_v34 }
 0x138   : > { %2039 = vmatprep.mubr.msk.f32.mxu1 %vm948_vm7, %v1485_v43  ;;  %v1455_v1 = vadd.f32 %v2679_v62, %v1432_v21  ;;  %v1221_v31 = vadd.f32 %v1205_v27, %v1168_v19  ;;  %v1099_v32 = vmul.f32 %v2438_v47, %v2878_v4  ;;  %v1153_v55 = vmul.f32 %v2476_v9, %v2922_v6  ;;  %v2971_v4 = vld [vmem:[#allocation2 + $0x98] sm:$0xff] }
 0x139   : > { %v1486_v35 = vmin.f32 %v1470_v39, 6.0  ;;  %v1380_v61 = vadd.f32 %v1364_v40, %v1327_v57  ;;  %v1062_v41 = vadd.f32 %v1046_v33, %v1009_v58  ;;  %v1365_v36 = vmul.f32 %v2604_v25, %v1344_v60  ;;  %v1346_v33 = vld [vmem:[#allocation2 + $0xa9] sm:$0xff] }
 0x13a   : > { %v1471_v2 = vmax.f32 %v1455_v1, 0.0  ;;  %v1274_v0 = vadd.f32 %v1258_v52, %v1221_v31  ;;  %v1418_v13 = vmul.f32 %v2609_v26, %v2961_v8  ;;  %v1010_v63 = vmul.f32 %v2402_v24, %v2896_v12  ;;  %v3001_v52 = vld [vmem:[#allocation2 + $0xa8] sm:$0xff] }
 0x13b   : > { %2040 = vmatmul.mubr.msk.f32.gmra.mrb[10].mxu1 %vm948_vm7, %v1486_v35  ;;  %v1433_v3 = vadd.f32 %v1417_v14, %v1380_v61  ;;  %v1115_v44 = vadd.f32 %v1099_v32, %v1062_v41  ;;  %v1047_v20 = vmul.f32 %v2431_v38, %v2903_v49  ;;  %v1206_v54 = vmul.f32 %v2538_v46, %v2931_v42  ;;  %v3013_v61 = vld [vmem:[#allocation2 + $0xb0] sm:$0xff] }
 0x13c   : > { %v1487_v5 = vmin.f32 %v1471_v2, 6.0  ;;  %v1328_v16 = vadd.f32 %v1312_v59, %v1274_v0  ;;  %v1259_v56 = vmul.f32 %v2543_v48, %v2933_v7  ;;  %v1100_v28 = vmul.f32 %v2438_v47, %v2905_v51 }
 0x13d   : > { %v1456_v22 = vadd.f32 %v2679_v62, %v1433_v3  ;;  %v1169_v23 = vadd.f32 %v1153_v55, %v1115_v44  ;;  %v1063_v53 = vadd.f32 %v1047_v20, %v1010_v63  ;;  %v1154_v12 = vmul.f32 %v2476_v9, %v2949_v34 }
 0x13e   : > { %2042 = vmatprep.mubr.msk.f32.mxu1 %vm948_vm7, %v1487_v5  ;;  %v1381_v30 = vadd.f32 %v1365_v36, %v1328_v16  ;;  %v1313_v45 = vmul.f32 %v2587_v11, %v2971_v4  ;;  %v1366_v15 = vmul.f32 %v2604_v25, %v2973_v17  ;;  %v1011_v50 = vmul.f32 %v2402_v24, %v2922_v6  ;;  %v1399_v36 = vld [vmem:[#allocation2 + $0xaa] sm:$0xff] }
 0x13f   : > { %v1472_v49 = vmax.f32 %v1456_v22, 0.0  ;;  %v1222_v29 = vadd.f32 %v1206_v54, %v1169_v23  ;;  %v1116_v27 = vadd.f32 %v1100_v28, %v1063_v53  ;;  %v1048_v51 = vmul.f32 %v2431_v38, %v2931_v42  ;;  %v1347_v23 = vld [vmem:[#allocation2 + $0xb1] sm:$0xff] }
 0x140   : > { %v1434_v18 = vadd.f32 %v1418_v13, %v1381_v30  ;;  %v1207_v14 = vmul.f32 %v2538_v46, %v1344_v60  ;;  %v1101_v43 = vmul.f32 %v2438_v47, %v2933_v7  ;;  %v1155_v57 = vmul.f32 %v2476_v9, %v2971_v4 }
 0x141   : > { %v1488_v37 = vmin.f32 %v1472_v49, 6.0  ;;  %v1275_v40 = vadd.f32 %v1259_v56, %v1222_v29  ;;  %v1170_v19 = vadd.f32 %v1154_v12, %v1116_v27  ;;  %v1064_v39 = vadd.f32 %v1048_v51, %v1011_v50  ;;  %v1400_v12 = vld [vmem:[#allocation2 + $0xb2] sm:$0xff]  ;;  %v1295_v27 = vld [vmem:[#allocation2 + $0xc0] sm:$0xff] }
 0x142   : > { %v1457_v21 = vadd.f32 %v2679_v62, %v1434_v18  ;;  %v1419_v42 = vmul.f32 %v2609_v26, %v1398_v10  ;;  %v1260_v58 = vmul.f32 %v2543_v48, %v2961_v8  ;;  %v1208_v59 = vmul.f32 %v2538_v46, %v2973_v17 }
 0x143   : > { %2043 = vmatmul.mubr.msk.f32.gmra.mrb[12].mxu1 %vm948_vm7, %v1488_v37  ;;  %v1329_v6 = vadd.f32 %v1313_v45, %v1275_v40  ;;  %v1223_v7 = vadd.f32 %v1207_v14, %v1170_v19  ;;  %v1117_v31 = vadd.f32 %v1101_v43, %v1064_v39  ;;  %v1314_v35 = vmul.f32 %v2587_v11, %v3001_v52  ;;  %v1348_v40 = vld [vmem:[#allocation2 + $0xc1] sm:$0xff] }
 0x144   : > { %v1473_v1 = vmax.f32 %v1457_v21, 0.0  ;;  %v1012_v41 = vmul.f32 %v2402_v24, %v2949_v34  ;;  %v1049_v55 = vmul.f32 %v2431_v38, %v1344_v60  ;;  %v1367_v3 = vmul.f32 %v2604_v25, %v1346_v33 }
 0x145   : > { %v1382_v32 = vadd.f32 %v1366_v15, %v1329_v6  ;;  %v1276_v0 = vadd.f32 %v1260_v58, %v1223_v7  ;;  %v1171_v13 = vadd.f32 %v1155_v57, %v1117_v31  ;;  %v1102_v16 = vmul.f32 %v2438_v47, %v2961_v8 }
 0x146   : > { %v1489_v2 = vmin.f32 %v1473_v1, 6.0  ;;  %v1065_v5 = vadd.f32 %v1049_v55, %v1012_v41  ;;  %v1156_v63 = vmul.f32 %v2476_v9, %v3001_v52  ;;  %v1261_v60 = vmul.f32 %v2543_v48, %v1398_v10  ;;  %v1296_v55 = vld [vmem:[#allocation2 + $0xc8] sm:$0xff] }
 0x147   : > { %v1435_v44 = vadd.f32 %v1419_v42, %v1382_v32  ;;  %v1330_v20 = vadd.f32 %v1314_v35, %v1276_v0  ;;  %v1224_v34 = vadd.f32 %v1208_v59, %v1171_v13  ;;  %v1315_v22 = vmul.f32 %v2587_v11, %v3013_v61  ;;  %v1401_v42 = vld [vmem:[#allocation2 + $0xc2] sm:$0xff] }
 0x148   : > { %2045 = vmatprep.mubr.msk.f32.mxu1 %vm948_vm7, %v1489_v2  ;;  %v1420_v56 = vmul.f32 %v2609_v26, %v1399_v36  ;;  %v1118_v30 = vadd.f32 %v1102_v16, %v1065_v5  ;;  %v1209_v8 = vmul.f32 %v2538_v46, %v1346_v33  ;;  %v1013_v49 = vmul.f32 %v2402_v24, %v2971_v4 }
 0x149   : > { %v1458_v54 = vadd.f32 %v2679_v62, %v1435_v44  ;;  %v1383_v53 = vadd.f32 %v1367_v3, %v1330_v20  ;;  %v1277_v28 = vadd.f32 %v1261_v60, %v1224_v34  ;;  %v1050_v29 = vmul.f32 %v2431_v38, %v2973_v17 }
 0x14a   : > { %v1368_v15 = vmul.f32 %v2604_v25, %v1347_v23  ;;  %v1172_v18 = vadd.f32 %v1156_v63, %v1118_v30  ;;  %v1103_v50 = vmul.f32 %v2438_v47, %v1398_v10  ;;  %v1157_v43 = vmul.f32 %v2476_v9, %v3013_v61 }
 0x14b   : > { %v1474_v45 = vmax.f32 %v1458_v54, 0.0  ;;  %v1436_v51 = vadd.f32 %v1420_v56, %v1383_v53  ;;  %v1331_v37 = vadd.f32 %v1315_v22, %v1277_v28  ;;  %v1066_v14 = vadd.f32 %v1050_v29, %v1013_v49 }
 0x14c   : > { %v1421_v4 = vmul.f32 %v2609_v26, %v1400_v12  ;;  %v1225_v19 = vadd.f32 %v1209_v8, %v1172_v18  ;;  %v1262_v17 = vmul.f32 %v2543_v48, %v1399_v36  ;;  %v1316_v6 = vmul.f32 %v2587_v11, %v1295_v27  ;;  %v1402_v8 = vld [vmem:[#allocation2 + $0xca] sm:$0xff]  ;;  %v2109_v18 = vld [vmem:[%s3179_s3 + $0x2] ss:$0 sm:$0xff] }
 0x14d   : > { %v1490_v21 = vmin.f32 %v1474_v45, 6.0  ;;  %v1459_v39 = vadd.f32 %v2679_v62, %v1436_v51  ;;  %v1384_v57 = vadd.f32 %v1368_v15, %v1331_v37  ;;  %v1119_v10 = vadd.f32 %v1103_v50, %v1066_v14  ;;  %v1297_v45 = vld [vmem:[#allocation2 + $0xd8] sm:$0xff] }
 0x14e   : > { %v1278_v58 = vadd.f32 %v1262_v17, %v1225_v19  ;;  %v1369_v1 = vmul.f32 %v2604_v25, %v1348_v40  ;;  %v1014_v7 = vmul.f32 %v2402_v24, %v3001_v52  ;;  %v1051_v31 = vmul.f32 %v2431_v38, %v1346_v33  ;;  %v1349_v52 = vld [vmem:[#allocation2 + $0xc9] sm:$0xff]  ;;  %v1350_v37 = vld [vmem:[#allocation2 + $0xd9] sm:$0xff] }
 0x14f   : > { %2046 = vmatmul.mubr.msk.f32.gmra.mrb[14].mxu1 %vm948_vm7, %v1490_v21  ;;  %v1475_v59 = vmax.f32 %v1459_v39, 0.0  ;;  %v1437_v32 = vadd.f32 %v1421_v4, %v1384_v57  ;;  %v1173_v35 = vadd.f32 %v1157_v43, %v1119_v10  ;;  %v1210_v41 = vmul.f32 %v2538_v46, %v1347_v23  ;;  %v1298_v19 = vld [vmem:[#allocation2 + $0xe0] sm:$0xff] }
 0x150   : > { %v1332_v2 = vadd.f32 %v1316_v6, %v1278_v58  ;;  %v1422_v0 = vmul.f32 %v2609_v26, %v1401_v42  ;;  %v1067_v3 = vadd.f32 %v1051_v31, %v1014_v7  ;;  %v1104_v13 = vmul.f32 %v2438_v47, %v1399_v36  ;;  %v2108_v47 = vld [vmem:[%s3179_s3] ss:$0 sm:$0xff] }
 0x151   : > { %v1491_v44 = vmin.f32 %v1475_v59, 6.0  ;;  %v1460_v5 = vadd.f32 %v2679_v62, %v1437_v32  ;;  %v1226_v16 = vadd.f32 %v1210_v41, %v1173_v35  ;;  %v1263_v24 = vmul.f32 %v2543_v48, %v1400_v12  ;;  %v1403_v17 = vld [vmem:[#allocation2 + $0xda] sm:$0xff] }
 0x152   : > { %v1385_v33 = vadd.f32 %v1369_v1, %v1332_v2  ;;  %v1317_v63 = vmul.f32 %v2587_v11, %v1296_v55  ;;  %v1120_v20 = vadd.f32 %v1104_v13, %v1067_v3  ;;  %v1158_v34 = vmul.f32 %v2476_v9, %v1295_v27  ;;  %v1351_v32 = vld [vmem:[#allocation2 + $0xe1] sm:$0xff] }
 0x153   : > { %2048 = vmatprep.mubr.msk.f32.mxu1 %vm948_vm7, %v1491_v44  ;;  %v1476_v60 = vmax.f32 %v1460_v5, 0.0  ;;  %v1279_v22 = vadd.f32 %v1263_v24, %v1226_v16  ;;  %v1015_v36 = vmul.f32 %v2108_v47, %v3013_v61  ;;  %v1052_v54 = vmul.f32 %v2431_v38, %v1347_v23 }
 0x154   : > { %v1438_v56 = vadd.f32 %v1422_v0, %v1385_v33  ;;  %v1370_v30 = vmul.f32 %v2604_v25, %v1349_v52  ;;  %v1174_v53 = vadd.f32 %v1158_v34, %v1120_v20  ;;  %v1211_v28 = vmul.f32 %v2538_v46, %v1348_v40  ;;  %v1908_v34 = vld [vmem:[%s2232_s16 + $0x19] sm:$0xff] }
 0x155   : > { %v1492_v49 = vmin.f32 %v1476_v60, 6.0  ;;  %v1333_v29 = vadd.f32 %v1317_v63, %v1279_v22  ;;  %v1068_v15 = vadd.f32 %v1052_v54, %v1015_v36  ;;  %v1105_v27 = vmul.f32 %v2109_v18, %v1400_v12  ;;  %v1911_v54 = vld [vmem:[%s2232_s16 + $0x39] sm:$0xff] }
 0x156   : > { %v1461_v61 = vadd.f32 %v2679_v62, %v1438_v56  ;;  %v1227_v50 = vadd.f32 %v1211_v28, %v1174_v53  ;;  %v1264_v38 = vmul.f32 %v2543_v48, %v1401_v42  ;;  %v1423_v51 = vmul.f32 %v2609_v26, %v1402_v8 }
 0x157   : > { %2049 = vmatmul.mubr.msk.f32.gmra.mrb[16].mxu1 %vm948_vm7, %v1492_v49  ;;  %v1386_v23 = vadd.f32 %v1370_v30, %v1333_v29  ;;  %v1121_v40 = vadd.f32 %v1105_v27, %v1068_v15  ;;  %v1159_v14 = vmul.f32 %v2476_v9, %v1296_v55  ;;  %v1318_v4 = vmul.f32 %v2587_v11, %v1297_v45  ;;  %v1404_v55 = vld [vmem:[#allocation2 + $0xe2] sm:$0xff]  ;;  %v1913_v45 = vld [vmem:[%s2232_s16 + $0x51] sm:$0xff] }
 0x158   : > { %v1477_v43 = vmax.f32 %v1461_v61, 0.0  ;;  %v1280_v21 = vadd.f32 %v1264_v38, %v1227_v50  ;;  %v1212_v57 = vmul.f32 %v2538_v46, %v1349_v52  ;;  %v1371_v10 = vmul.f32 %v2604_v25, %v1350_v37  ;;  %v1912_v27 = vld [vmem:[%s2232_s16 + $0x49] sm:$0xff] }
 0x159   : > { %v1439_v12 = vadd.f32 %v1423_v51, %v1386_v23  ;;  %v1175_v39 = vadd.f32 %v1159_v14, %v1121_v40  ;;  %v1265_v7 = vmul.f32 %v2543_v48, %v1402_v8  ;;  %v1319_v9 = vmul.f32 %v2587_v11, %v1298_v19  ;;  %v1910_v8 = vld [vmem:[%s2232_s16 + $0x31] sm:$0xff]  ;;  %v1915_v51 = vld [vmem:[%s2232_s16 + $0x69] sm:$0xff]  ;;  %v1914_v14 = vld [vmem:[%s2232_s16 + $0x61] sm:$0xff] }
 0x15a   : > { %v1493_v6 = vmin.f32 %v1477_v43, 6.0  ;;  %v1334_v42 = vadd.f32 %v1318_v4, %v1280_v21  ;;  %v1424_v59 = vmul.f32 %v2609_v26, %v1403_v17  ;;  %v1372_v3 = vmul.f32 %v2604_v25, %v1351_v32  ;;  %v3090_v25 = vld [vmem:[%s3182_s6] ss:$0 sm:$0xff] }
 0x15b   : > { %v1462_v58 = vadd.f32 %v2679_v62, %v1439_v12  ;;  %v1228_v1 = vadd.f32 %v1212_v57, %v1175_v39  ;;  %v1425_v13 = vmul.f32 %v2609_v26, %v1404_v55  ;;  %vm3246_vm0 = vcmask 64512   ;;  %v1917_v12 = vld [vmem:[%s2232_s16 + $0x81] sm:$0xff]  ;;  %v1916_v57 = vld [vmem:[%s2232_s16 + $0x79] sm:$0xff] }
 0x15c   : > { %2051 = vmatprep.mubr.msk.f32.mxu1 %vm948_vm7, %v1493_v6  ;;  %v1387_v31 = vadd.f32 %v1371_v10, %v1334_v42  ;;  %vm3248_vm8 = vmmov %vm3246_vm0 }
 0x15d   : > { %v1478_v35 = vmax.f32 %v1462_v58, 0.0  ;;  %v1281_v41 = vadd.f32 %v1265_v7, %v1228_v1  ;;  %vm3249_vm11 = vmmov %vm3246_vm0  ;;  %v1919_v1 = vld [vmem:[%s2232_s16 + $0x99] sm:$0xff] }
 0x15e   : > { %v1440_v46 = vadd.f32 %v1424_v59, %v1387_v31  ;;  %vm3250_vm13 = vmmov %vm3246_vm0  ;;  %v1918_v31 = vld [vmem:[%s2232_s16 + $0x91] sm:$0xff] }
 0x15f   : > { %v1494_v2 = vmin.f32 %v1478_v35, 6.0  ;;  %v1335_v0 = vadd.f32 %v1319_v9, %v1281_v41  ;;  %vm3251_vm15 = vmmov %vm3246_vm0 }
 0x160   : > { %v1463_v48 = vadd.f32 %v2679_v62, %v1440_v46  ;;  %vm3252_vm12 = vmmov %vm3246_vm0  ;;  %v1921_v46 = vld [vmem:[%s2232_s16 + $0xb1] sm:$0xff] }
 0x161   : > { %2052 = vmatmul.mubr.msk.f32.gmra.mrb[18].mxu1 %vm948_vm7, %v1494_v2  ;;  %v1388_v11 = vadd.f32 %v1372_v3, %v1335_v0  ;;  %vm3253_vm14 = vmmov %vm3246_vm0  ;;  %v1920_v0 = vld [vmem:[%s2232_s16 + $0xa9] sm:$0xff] }
 0x162   : > { %v1479_v44 = vmax.f32 %v1463_v48, 0.0  ;;  %vm3254_vm4 = vmmov %vm3246_vm0 }
 0x163   : > { %v1441_v5 = vadd.f32 %v1425_v13, %v1388_v11  ;;  %vm3255_vm10 = vmmov %vm3246_vm0 }
 0x164   : > { %v1495_v16 = vmin.f32 %v1479_v44, 6.0  ;;  %vm3256_vm5 = vmmov %vm3246_vm0  ;;  %v1923_v44 = vld [vmem:[%s2232_s16 + $0xc9] sm:$0xff] }
 0x165   : > { %v1464_v24 = vadd.f32 %v2679_v62, %v1441_v5  ;;  %v1909_v62 = vld [vmem:[%s2232_s16 + $0x21] sm:$0xff]  ;;  %vm3257_vm2 = vmmov %vm3246_vm0 }
 0x166   : > { %2054 = vmatprep.mubr.msk.f32.mxu1 %vm948_vm7, %v1495_v16  ;;  %vm3258_vm1 = vmmov %vm3246_vm0 }
 0x167   : > { %v1480_v52 = vmax.f32 %v1464_v24, 0.0  ;;  %vm3259_vm3 = vmmov %vm3246_vm0  ;;  %v1922_v24 = vld [vmem:[%s2232_s16 + $0xc1] sm:$0xff] }
 0x168   : > { %vm3260_vm6 = vmmov %vm3246_vm0 }
 0x169   : > { %v1496_v33 = vmin.f32 %v1480_v52, 6.0  ;;  %vm3261_vm9 = vmmov %vm3246_vm0 }
 0x16b   : > { %2055 = vmatmul.mubr.msk.f32.gmra.mrb[20].mxu1 %vm948_vm7, %v1496_v33  ;;  %vm3247_vm7 = vmmov %vm3246_vm0 }
 0x1ed   : > { %v2035_v26 = vpop.f32.mrb[6].mxu1 }
 0x1ee   : > { %v1628_v63 = vadd.f32 %v2035_v26, %v3090_v25  ;;  %v1622_v20 = vpop.f32.mrb[7].mxu1 }
 0x1ef   : > { %v1623_v60 = vadd.f32 %v3090_v25, %v1622_v20 }
 0x1f0   : > { %v1721_v22 = vadd.f32 %v1909_v62, %v1628_v63 }
 0x1f1   : > { %v1720_v47 = vadd.f32 %v1908_v34, %v1623_v60 }
 0x1f2   : > { %1737 = vst.msk [vmem:[%s3098_s24 + $0x8] sm:$0xff] %vm3246_vm0, %v1721_v22 }
 0x1f3   : > { %1736 = vst.msk [vmem:[%s3098_s24] sm:$0xff] %vm3247_vm7, %v1720_v47 }
 0x206   : > { %v2038_v36 = vpop.f32.mrb[8].mxu1 }
 0x207   : > { %v1638_v56 = vadd.f32 %v2038_v36, %v3090_v25  ;;  %v1632_v30 = vpop.f32.mrb[9].mxu1 }
 0x208   : > { %v1633_v53 = vadd.f32 %v3090_v25, %v1632_v30 }
 0x209   : > { %v1723_v28 = vadd.f32 %v1911_v54, %v1638_v56 }
 0x20a   : > { %v1722_v49 = vadd.f32 %v1910_v8, %v1633_v53 }
 0x20b   : > { %1739 = vst.msk [vmem:[%s3098_s24 + $0x18] sm:$0xff] %vm3248_vm8, %v1723_v28 }
 0x20c   : > { %1738 = vst.msk [vmem:[%s3098_s24 + $0x10] sm:$0xff] %vm3249_vm11, %v1722_v49 }
 0x20e   : > { %v2041_v29 = vpop.f32.mrb[10].mxu1 }
 0x20f   : > { %v1648_v15 = vadd.f32 %v2041_v29, %v3090_v25  ;;  %v1642_v18 = vpop.f32.mrb[11].mxu1 }
 0x210   : > { %v1643_v61 = vadd.f32 %v3090_v25, %v1642_v18 }
 0x211   : > { %v1725_v50 = vadd.f32 %v1913_v45, %v1648_v15 }
 0x212   : > { %v1724_v38 = vadd.f32 %v1912_v27, %v1643_v61 }
 0x213   : > { %1741 = vst.msk [vmem:[%s3098_s24 + $0x28] sm:$0xff] %vm3250_vm13, %v1725_v50 }
 0x214   : > { %1740 = vst.msk [vmem:[%s3098_s24 + $0x20] sm:$0xff] %vm3251_vm15, %v1724_v38 }
 0x216   : > { %v2044_v23 = vpop.f32.mrb[12].mxu1 }
 0x217   : > { %v1658_v37 = vadd.f32 %v2044_v23, %v3090_v25  ;;  %v1652_v40 = vpop.f32.mrb[13].mxu1 }
 0x218   : > { %v1653_v43 = vadd.f32 %v3090_v25, %v1652_v40 }
 0x219   : > { %v1727_v21 = vadd.f32 %v1915_v51, %v1658_v37 }
 0x21a   : > { %v1726_v4 = vadd.f32 %v1914_v14, %v1653_v43 }
 0x21b   : > { %1743 = vst.msk [vmem:[%s3098_s24 + $0x38] sm:$0xff] %vm3252_vm12, %v1727_v21 }
 0x21c   : > { %1742 = vst.msk [vmem:[%s3098_s24 + $0x30] sm:$0xff] %vm3253_vm14, %v1726_v4 }
 0x222   : > { %v2047_v19 = vpop.f32.mrb[14].mxu1 }
 0x223   : > { %v1668_v17 = vadd.f32 %v2047_v19, %v3090_v25  ;;  %v1662_v39 = vpop.f32.mrb[15].mxu1 }
 0x224   : > { %v1663_v6 = vadd.f32 %v3090_v25, %v1662_v39 }
 0x225   : > { %v1729_v42 = vadd.f32 %v1917_v12, %v1668_v17 }
 0x226   : > { %v1728_v10 = vadd.f32 %v1916_v57, %v1663_v6 }
 0x227   : > { %1745 = vst.msk [vmem:[%s3098_s24 + $0x48] sm:$0xff] %vm3254_vm4, %v1729_v42 }
 0x228   : > { %1744 = vst.msk [vmem:[%s3098_s24 + $0x40] sm:$0xff] %vm3255_vm10, %v1728_v10 }
 0x22a   : > { %v2050_v58 = vpop.f32.mrb[16].mxu1 }
 0x22b   : > { %v1678_v7 = vadd.f32 %v2050_v58, %v3090_v25  ;;  %v1672_v9 = vpop.f32.mrb[17].mxu1 }
 0x22c   : > { %v1673_v59 = vadd.f32 %v3090_v25, %v1672_v9 }
 0x22d   : > { %v1731_v32 = vadd.f32 %v1919_v1, %v1678_v7 }
 0x22e   : > { %v1730_v35 = vadd.f32 %v1918_v31, %v1673_v59 }
 0x22f   : > { %1747 = vst.msk [vmem:[%s3098_s24 + $0x58] sm:$0xff] %vm3256_vm5, %v1731_v32 }
 0x230   : > { %1746 = vst.msk [vmem:[%s3098_s24 + $0x50] sm:$0xff] %vm3257_vm2, %v1730_v35 }
 0x234   : > { %v2053_v41 = vpop.f32.mrb[18].mxu1 }
 0x235   : > { %v1688_v55 = vadd.f32 %v2053_v41, %v3090_v25  ;;  %v1682_v2 = vpop.f32.mrb[19].mxu1 }
 0x236   : > { %v1683_v3 = vadd.f32 %v3090_v25, %v1682_v2 }
 0x237   : > { %v1733_v48 = vadd.f32 %v1921_v46, %v1688_v55 }
 0x238   : > { %v1732_v11 = vadd.f32 %v1920_v0, %v1683_v3 }
 0x239   : > { %1749 = vst.msk [vmem:[%s3098_s24 + $0x68] sm:$0xff] %vm3258_vm1, %v1733_v48 }
 0x23a   : > { %1748 = vst.msk [vmem:[%s3098_s24 + $0x60] sm:$0xff] %vm3259_vm3, %v1732_v11 }
 0x23e   : > { %v2056_v13 = vpop.f32.mrb[20].mxu1 }
 0x23f   : > { %v1698_v5 = vadd.f32 %v2056_v13, %v3090_v25  ;;  %v1692_v16 = vpop.f32.mrb[21].mxu1 }
 0x240   : > { %v1693_v52 = vadd.f32 %v3090_v25, %v1692_v16 }
 0x241   : > { %v1735_v33 = vadd.f32 %v1923_v44, %v1698_v5 }
 0x242   : > { %v1734_v26 = vadd.f32 %v1922_v24, %v1693_v52 }
 0x243   : > { %1751 = vst.msk [vmem:[%s3098_s24 + $0x78] sm:$0xff] %vm3260_vm6, %v1735_v33 }
 0x244   : > { %1750 = vst.msk [vmem:[%s3098_s24 + $0x70] sm:$0xff] %vm3261_vm9, %v1734_v26 }
 0x245 PF: > { %s17_s28 = sadd.s32 1, %s2148_s28   ;;  %s3262_s24 = smov %s2140_s26 }
 0x246   : > { %p14_p7 = scmp.ge.s32.totalorder %s17_s28, 6   ;;  %s3263_s25 = smov %s2144_s27 }
 0x247   : > { %s3264_s26 = smov %s3267_s29  ;;  %s3265_s27 = smov %s3271_s30 }
 0x248   :  { %16 = sbr.rel (!%p14_p7) target bundleno = 3 (0x3), region = 82 }

</bundles_post_ra>
